<compile_context>
chip_gen: v5e
topology: v5e:2x2
jax: 0.10.0
libtpu: 0.0.40
codegen_flags: <defaults>
</compile_context>

<pallas_src>
import functools

import jax
import jax.numpy as jnp
from jax.experimental import pallas as pl
from jax.experimental.pallas import tpu as pltpu

BN_EPS = 1e-5


def _round_up(x, m):
    return (x + m - 1) // m * m


def _pick_row_tile(ho, wo, target_rows=512):
    """Largest th dividing ho with th*wo a multiple of 8 and <= target_rows."""
    cands = [t for t in range(1, ho + 1) if ho % t == 0 and (t * wo) % 8 == 0]
    if not cands:
        return ho                      # fall back to a full-H block
    small = [t for t in cands if t * wo <= target_rows]
    return max(small) if small else min(cands)


def _pick_flat_tile(r, target_rows=1024):
    for t in (target_rows, 512, 256, 128, 64, 32, 16, 8):
        if t <= r and r % t == 0:
            return t
    return r                            # single block (== full dim is legal)


# --------------------------------------------------------------------------
# Pass 1: conv (sum of k*k shifted matmuls, bf16 MXU / f32 acc) + BN partial
# per-channel sum / sum-of-squares accumulated across the (batch, H) grid axes.
# --------------------------------------------------------------------------
def _conv_stats_kernel(x_ref, w_ref, y_ref, sum_ref, sumsq_ref, *,
                       ksize, cin, th, wo):
    # x_ref:     (Hp, Wp, Cin)   padded NHWC image of one batch element (f32)
    # w_ref:     (k*k, Cin, tn)  conv weights for this channel block (bf16)
    # y_ref:     (th*wo, tn)     conv output rows for this (cb, n, hb) (f32)
    # sum/sumsq: (1, tn)         per-channel partial BN stats (f32), resident
    #                            across the inner (n, hb) grid axes.
    b = pl.program_id(1)
    hb = pl.program_id(2)

    @pl.when(jnp.logical_and(b == 0, hb == 0))
    def _init():
        sum_ref[...] = jnp.zeros_like(sum_ref)
        sumsq_ref[...] = jnp.zeros_like(sumsq_ref)

    tn = y_ref.shape[-1]
    h0 = hb * th                         # first output row of this H block

    acc = jnp.zeros((th * wo, tn), jnp.float32)
    for i in range(ksize):
        for j in range(ksize):
            # Shifted window for tap (i, j): rows h0+i .. h0+i+th, cols j .. j+wo.
            patch = x_ref[pl.ds(h0 + i, th), pl.ds(j, wo), :]        # (th, wo, cin)
            lhs = patch.reshape(th * wo, cin).astype(jnp.bfloat16)
            acc += jnp.dot(lhs, w_ref[i * ksize + j],
                           preferred_element_type=jnp.float32)

    y_ref[...] = acc.astype(y_ref.dtype)
    sum_ref[...] += jnp.sum(acc, axis=0, keepdims=True)
    sumsq_ref[...] += jnp.sum(acc * acc, axis=0, keepdims=True)


# --------------------------------------------------------------------------
# Pass 2: normalize with the folded per-channel scale/shift (one FMA / elem).
# --------------------------------------------------------------------------
def _bn_apply_kernel(y_ref, scale_ref, shift_ref, out_ref):
    out_ref[...] = (y_ref[...] * scale_ref[...]
                    + shift_ref[...]).astype(out_ref.dtype)


@functools.partial(jax.jit, static_argnames=("ksize",))
def cbr_forward(x, weight, gamma, beta, *, ksize):
    """x: (N, in_c, H, W); weight: (out_c, in_c, k, k); gamma/beta: (out_c,)."""
    n, cin, h, w = x.shape
    cout = weight.shape[0]
    pad = ksize // 2                      # padding=None, dilation=1 path of CBR
    ho = h + 2 * pad - ksize + 1          # stride = 1
    wo = w + 2 * pad - ksize + 1
    hp, wp = h + 2 * pad, w + 2 * pad

    cin_p = _round_up(cin, 8)             # contraction dim, sublane friendly
    cout_p = _round_up(cout, 128)         # lane-dense output channels
    r = n * ho * wo

    # NHWC + spatial zero padding (no k^2 im2col materialization).
    x_nhwc = jnp.transpose(x, (0, 2, 3, 1)).astype(jnp.float32)
    xp = jnp.pad(x_nhwc, ((0, 0), (pad, pad), (pad, pad), (0, cin_p - cin)))

    # (out_c, in_c, kh, kw) -> (kh*kw, cin_p, cout_p); bf16 MXU operand.
    wmat = jnp.transpose(weight, (2, 3, 1, 0)).reshape(ksize * ksize, cin, cout)
    wmat = jnp.pad(wmat, ((0, 0), (0, cin_p - cin), (0, cout_p - cout)))
    wmat = wmat.astype(jnp.bfloat16)

    gamma_p = jnp.pad(gamma.astype(jnp.float32), (0, cout_p - cout)).reshape(1, cout_p)
    beta_p = jnp.pad(beta.astype(jnp.float32), (0, cout_p - cout)).reshape(1, cout_p)

    # Tiling: tn output channels on the lane axis, th output rows of H per step.
    tn = 256 if cout_p % 256 == 0 else 128
    num_cb = cout_p // tn
    th = _pick_row_tile(ho, wo, target_rows=512)
    num_hb = ho // th

    kernel = functools.partial(_conv_stats_kernel,
                               ksize=ksize, cin=cin_p, th=th, wo=wo)
    y_flat, csum, csumsq = pl.pallas_call(
        kernel,
        grid=(num_cb, n, num_hb),
        in_specs=[
            pl.BlockSpec((None, hp, wp, cin_p), lambda cb, b, hb: (b, 0, 0, 0)),
            pl.BlockSpec((ksize * ksize, cin_p, tn), lambda cb, b, hb: (0, 0, cb)),
        ],
        out_specs=[
            pl.BlockSpec((th * wo, tn), lambda cb, b, hb: (b * num_hb + hb, cb)),
            pl.BlockSpec((1, tn), lambda cb, b, hb: (0, cb)),
            pl.BlockSpec((1, tn), lambda cb, b, hb: (0, cb)),
        ],
        out_shape=[
            jax.ShapeDtypeStruct((r, cout_p), jnp.float32),
            jax.ShapeDtypeStruct((1, cout_p), jnp.float32),
            jax.ShapeDtypeStruct((1, cout_p), jnp.float32),
        ],
        compiler_params=pltpu.CompilerParams(
            dimension_semantics=("parallel", "arbitrary", "arbitrary"),
            vmem_limit_bytes=48 * 1024 * 1024,   # <= v7x 64 MiB physical VMEM
        ),
    )(xp, wmat)

    # Fold BatchNorm (training mode, biased variance) into one FMA per element.
    inv_count = 1.0 / r
    mean = csum * inv_count
    var = jnp.maximum(csumsq * inv_count - mean * mean, 0.0)
    inv_std = jax.lax.rsqrt(var + BN_EPS)
    scale = gamma_p * inv_std
    shift = beta_p - mean * scale

    tr = _pick_flat_tile(r, target_rows=1024)
    out_flat = pl.pallas_call(
        _bn_apply_kernel,
        grid=(r // tr, num_cb),
        in_specs=[
            pl.BlockSpec((tr, tn), lambda rb, cb: (rb, cb)),
            pl.BlockSpec((1, tn), lambda rb, cb: (0, cb)),
            pl.BlockSpec((1, tn), lambda rb, cb: (0, cb)),
        ],
        out_specs=pl.BlockSpec((tr, tn), lambda rb, cb: (rb, cb)),
        out_shape=jax.ShapeDtypeStruct((r, cout_p), jnp.float32),
        compiler_params=pltpu.CompilerParams(
            dimension_semantics=("parallel", "parallel"),
            vmem_limit_bytes=48 * 1024 * 1024,
        ),
    )(y_flat, scale, shift)

    out = out_flat[:, :cout].reshape(n, ho, wo, cout)
    return jnp.transpose(out, (0, 3, 1, 2))   # act = Identity; back to NCHW


def _reference(x, weight, gamma, beta, ksize):
    # Plain-JAX reference matching the kernel's numerical contract: conv with
    # bf16-rounded operands and f32 accumulation, then training-mode BN in f32.
    pad = ksize // 2
    xq = x.astype(jnp.bfloat16).astype(jnp.float32)
    wq = weight.astype(jnp.bfloat16).astype(jnp.float32)
    y = jax.lax.conv_general_dilated(
        xq, wq, window_strides=(1, 1),
        padding=[(pad, pad), (pad, pad)],
        dimension_numbers=("NCHW", "OIHW", "NCHW"),
        precision=jax.lax.Precision.HIGHEST)
    mean = jnp.mean(y, axis=(0, 2, 3), keepdims=True)
    var = jnp.mean((y - mean) ** 2, axis=(0, 2, 3), keepdims=True)
    yhat = (y - mean) * jax.lax.rsqrt(var + BN_EPS)
    return yhat * gamma.reshape(1, -1, 1, 1) + beta.reshape(1, -1, 1, 1)


if __name__ == "__main__":
    key = jax.random.PRNGKey(0)
    k_x, k_w, k_g, k_b = jax.random.split(key, 4)

    N, IN_C, OUT_C, H, W, KSIZE = 2, 4, 8, 16, 16, 3

    x = jax.random.normal(k_x, (N, IN_C, H, W), dtype=jnp.float32)
    # nn.Conv2d(in_c, out_c, ksize) weight shape: (out_c, in_c, k, k)
    weight = jax.random.normal(k_w, (OUT_C, IN_C, KSIZE, KSIZE), dtype=jnp.float32) * 0.1
    # BatchNorm2d affine params (non-trivial values to exercise scale/shift).
    gamma = 1.0 + 0.1 * jax.random.normal(k_g, (OUT_C,), dtype=jnp.float32)
    beta = 0.1 * jax.random.normal(k_b, (OUT_C,), dtype=jnp.float32)

    out = cbr_forward(x, weight, gamma, beta, ksize=KSIZE)
    out = jax.block_until_ready(out)

    ref = _reference(x, weight, gamma, beta, KSIZE)
    assert out.shape == (N, OUT_C, H, W)
    max_err = float(jnp.max(jnp.abs(out - ref)))
    assert jnp.allclose(out, ref, rtol=2e-3, atol=2e-3), max_err

    print("KERNEL_OK")
</pallas_src>

<mosaic_0001>
module attributes {stable_mosaic.version = 11 : i64} {
  func.func @_bn_apply_kernel(%arg0: i32, %arg1: i32, %arg2: memref<512x128xf32, #tpu.memory_space<vmem>>, %arg3: memref<1x128xf32, #tpu.memory_space<vmem>>, %arg4: memref<1x128xf32, #tpu.memory_space<vmem>>, %arg5: memref<512x128xf32, #tpu.memory_space<vmem>>) attributes {dimension_semantics = [#tpu.dimension_semantics<parallel>, #tpu.dimension_semantics<parallel>], iteration_bounds = array<i64: 1, 1>, scalar_prefetch = 0 : i64, scratch_operands = 0 : i64, tpu.core_type = #tpu.core_type<tc>, window_params = [{transform_indices = @transform_0, window_bounds = array<i64: 512, 128>}, {transform_indices = @transform_1, window_bounds = array<i64: 1, 128>}, {transform_indices = @transform_2, window_bounds = array<i64: 1, 128>}, {transform_indices = @transform_3, window_bounds = array<i64: 512, 128>}]} {
    %c0 = arith.constant 0 : index
    %c0_0 = arith.constant 0 : index
    %0 = vector.load %arg2[%c0, %c0_0] : memref<512x128xf32, #tpu.memory_space<vmem>>, vector<512x128xf32>
    %c0_1 = arith.constant 0 : index
    %c0_2 = arith.constant 0 : index
    %1 = vector.load %arg3[%c0_1, %c0_2] : memref<1x128xf32, #tpu.memory_space<vmem>>, vector<1x128xf32>
    %2 = vector.broadcast %1 : vector<1x128xf32> to vector<512x128xf32>
    %3 = arith.mulf %0, %2 : vector<512x128xf32>
    %c0_3 = arith.constant 0 : index
    %c0_4 = arith.constant 0 : index
    %4 = vector.load %arg4[%c0_3, %c0_4] : memref<1x128xf32, #tpu.memory_space<vmem>>, vector<1x128xf32>
    %5 = vector.broadcast %4 : vector<1x128xf32> to vector<512x128xf32>
    %6 = arith.addf %3, %5 : vector<512x128xf32>
    %c0_5 = arith.constant 0 : index
    %c0_6 = arith.constant 0 : index
    %7 = vector.load %arg5[%c0_5, %c0_6] : memref<512x128xf32, #tpu.memory_space<vmem>>, vector<512x128xf32>
    tpu.vector_store %arg5[%c0_5, %c0_6], %6 {strides = array<i32>} : memref<512x128xf32, #tpu.memory_space<vmem>>, vector<512x128xf32>,
    return
  }
  func.func @transform_0(%arg0: i32, %arg1: i32) -> (i32, i32) {
    %c0_i32 = arith.constant 0 : i32
    return %arg0, %arg1 : i32, i32
  }
  func.func @transform_1(%arg0: i32, %arg1: i32) -> (i32, i32) {
    %c0_i32 = arith.constant 0 : i32
    %c0_i32_0 = arith.constant 0 : i32
    return %c0_i32, %arg1 : i32, i32
  }
  func.func @transform_2(%arg0: i32, %arg1: i32) -> (i32, i32) {
    %c0_i32 = arith.constant 0 : i32
    %c0_i32_0 = arith.constant 0 : i32
    return %c0_i32, %arg1 : i32, i32
  }
  func.func @transform_3(%arg0: i32, %arg1: i32) -> (i32, i32) {
    %c0_i32 = arith.constant 0 : i32
    return %arg0, %arg1 : i32, i32
  }
}

module attributes {stable_mosaic.version = 11 : i64} {
  func.func @_conv_stats_kernel(%arg0: i32, %arg1: i32, %arg2: i32, %arg3: memref<1x18x18x8xf32, #tpu.memory_space<vmem>>, %arg4: memref<9x8x128xbf16, #tpu.memory_space<vmem>>, %arg5: memref<256x128xf32, #tpu.memory_space<vmem>>, %arg6: memref<1x128xf32, #tpu.memory_space<vmem>>, %arg7: memref<1x128xf32, #tpu.memory_space<vmem>>) attributes {dimension_semantics = [#tpu.dimension_semantics<parallel>, #tpu.dimension_semantics<arbitrary>, #tpu.dimension_semantics<arbitrary>], iteration_bounds = array<i64: 1, 2, 1>, scalar_prefetch = 0 : i64, scratch_operands = 0 : i64, tpu.core_type = #tpu.core_type<tc>, window_params = [{transform_indices = @transform_0, window_bounds = array<i64: 1, 18, 18, 8>}, {transform_indices = @transform_1, window_bounds = array<i64: 9, 8, 128>}, {transform_indices = @transform_2, window_bounds = array<i64: 256, 128>}, {transform_indices = @transform_3, window_bounds = array<i64: 1, 128>}, {transform_indices = @transform_4, window_bounds = array<i64: 1, 128>}]} {
    %c0_i32 = arith.constant 0 : i32
    %0 = arith.cmpi eq, %arg1, %c0_i32 : i32
    %c0_i32_0 = arith.constant 0 : i32
    %1 = arith.cmpi eq, %arg2, %c0_i32_0 : i32
    %2 = arith.andi %0, %1 : i1
    %3 = arith.extui %2 : i1 to i32
    %c0_i32_1 = arith.constant 0 : i32
    %4 = arith.cmpi ne, %3, %c0_i32_1 : i32
    scf.if %4 {
      %cst_75 = arith.constant 0.000000e+00 : f32
      %109 = vector.broadcast %cst_75 : f32 to vector<1x128xf32>
      %c0_76 = arith.constant 0 : index
      %c0_77 = arith.constant 0 : index
      %110 = vector.load %arg6[%c0_76, %c0_77] : memref<1x128xf32, #tpu.memory_space<vmem>>, vector<1x128xf32>
      tpu.vector_store %arg6[%c0_76, %c0_77], %109 {strides = array<i32>} : memref<1x128xf32, #tpu.memory_space<vmem>>, vector<1x128xf32>,
      %cst_78 = arith.constant 0.000000e+00 : f32
      %111 = vector.broadcast %cst_78 : f32 to vector<1x128xf32>
      %c0_79 = arith.constant 0 : index
      %c0_80 = arith.constant 0 : index
      %112 = vector.load %arg7[%c0_79, %c0_80] : memref<1x128xf32, #tpu.memory_space<vmem>>, vector<1x128xf32>
      tpu.vector_store %arg7[%c0_79, %c0_80], %111 {strides = array<i32>} : memref<1x128xf32, #tpu.memory_space<vmem>>, vector<1x128xf32>,
    } else {
    }
    %c16_i32 = arith.constant 16 : i32
    %5 = arith.muli %arg2, %c16_i32 : i32
    %cst = arith.constant 0.000000e+00 : f32
    %6 = vector.broadcast %cst : f32 to vector<256x128xf32>
    %c0_i32_2 = arith.constant 0 : i32
    %7 = arith.addi %5, %c0_i32_2 : i32
    %c0 = arith.constant 0 : index
    %8 = arith.index_cast %7 : i32 to index
    %c0_3 = arith.constant 0 : index
    %c0_4 = arith.constant 0 : index
    %9 = vector.load %arg3[%c0, %8, %c0_3, %c0_4] : memref<1x18x18x8xf32, #tpu.memory_space<vmem>>, vector<1x16x16x8xf32>
    %10 = vector.shape_cast %9 : vector<1x16x16x8xf32> to vector<16x16x8xf32>
    %11 = vector.shape_cast %10 : vector<16x16x8xf32> to vector<256x8xf32>
    %12 = arith.truncf %11 : vector<256x8xf32> to vector<256x8xbf16>
    %c0_5 = arith.constant 0 : index
    %c0_6 = arith.constant 0 : index
    %c0_7 = arith.constant 0 : index
    %13 = vector.load %arg4[%c0_5, %c0_6, %c0_7] : memref<9x8x128xbf16, #tpu.memory_space<vmem>>, vector<1x8x128xbf16>
    %14 = vector.shape_cast %13 : vector<1x8x128xbf16> to vector<8x128xbf16>
    %cst_8 = arith.constant dense<0.000000e+00> : vector<256x128xf32>
    %15 = tpu.matmul %12, %14, %cst_8 {dimension_numbers = #tpu.dot_dimension_numbers<[1], [0], [0], [1], [0, 0, 1, 1], [], []>} : vector<256x8xbf16>, vector<8x128xbf16>, vector<256x128xf32> -> vector<256x128xf32>
    %16 = arith.addf %6, %15 : vector<256x128xf32>
    %c0_i32_9 = arith.constant 0 : i32
    %17 = arith.addi %5, %c0_i32_9 : i32
    %c0_10 = arith.constant 0 : index
    %18 = arith.index_cast %17 : i32 to index
    %c1 = arith.constant 1 : index
    %c0_11 = arith.constant 0 : index
    %19 = vector.load %arg3[%c0_10, %18, %c1, %c0_11] : memref<1x18x18x8xf32, #tpu.memory_space<vmem>>, vector<1x16x16x8xf32>
    %20 = vector.shape_cast %19 : vector<1x16x16x8xf32> to vector<16x16x8xf32>
    %21 = vector.shape_cast %20 : vector<16x16x8xf32> to vector<256x8xf32>
    %22 = arith.truncf %21 : vector<256x8xf32> to vector<256x8xbf16>
    %c1_12 = arith.constant 1 : index
    %c0_13 = arith.constant 0 : index
    %c0_14 = arith.constant 0 : index
    %23 = vector.load %arg4[%c1_12, %c0_13, %c0_14] : memref<9x8x128xbf16, #tpu.memory_space<vmem>>, vector<1x8x128xbf16>
    %24 = vector.shape_cast %23 : vector<1x8x128xbf16> to vector<8x128xbf16>
    %cst_15 = arith.constant dense<0.000000e+00> : vector<256x128xf32>
    %25 = tpu.matmul %22, %24, %cst_15 {dimension_numbers = #tpu.dot_dimension_numbers<[1], [0], [0], [1], [0, 0, 1, 1], [], []>} : vector<256x8xbf16>, vector<8x128xbf16>, vector<256x128xf32> -> vector<256x128xf32>
    %26 = arith.addf %16, %25 : vector<256x128xf32>
    %c0_i32_16 = arith.constant 0 : i32
    %27 = arith.addi %5, %c0_i32_16 : i32
    %c0_17 = arith.constant 0 : index
    %28 = arith.index_cast %27 : i32 to index
    %c2 = arith.constant 2 : index
    %c0_18 = arith.constant 0 : index
    %29 = vector.load %arg3[%c0_17, %28, %c2, %c0_18] : memref<1x18x18x8xf32, #tpu.memory_space<vmem>>, vector<1x16x16x8xf32>
    %30 = vector.shape_cast %29 : vector<1x16x16x8xf32> to vector<16x16x8xf32>
    %31 = vector.shape_cast %30 : vector<16x16x8xf32> to vector<256x8xf32>
    %32 = arith.truncf %31 : vector<256x8xf32> to vector<256x8xbf16>
    %c2_19 = arith.constant 2 : index
    %c0_20 = arith.constant 0 : index
    %c0_21 = arith.constant 0 : index
    %33 = vector.load %arg4[%c2_19, %c0_20, %c0_21] : memref<9x8x128xbf16, #tpu.memory_space<vmem>>, vector<1x8x128xbf16>
    %34 = vector.shape_cast %33 : vector<1x8x128xbf16> to vector<8x128xbf16>
    %cst_22 = arith.constant dense<0.000000e+00> : vector<256x128xf32>
    %35 = tpu.matmul %32, %34, %cst_22 {dimension_numbers = #tpu.dot_dimension_numbers<[1], [0], [0], [1], [0, 0, 1, 1], [], []>} : vector<256x8xbf16>, vector<8x128xbf16>, vector<256x128xf32> -> vector<256x128xf32>
    %36 = arith.addf %26, %35 : vector<256x128xf32>
    %c1_i32 = arith.constant 1 : i32
    %37 = arith.addi %5, %c1_i32 : i32
    %c0_23 = arith.constant 0 : index
    %38 = arith.index_cast %37 : i32 to index
    %c0_24 = arith.constant 0 : index
    %c0_25 = arith.constant 0 : index
    %39 = vector.load %arg3[%c0_23, %38, %c0_24, %c0_25] : memref<1x18x18x8xf32, #tpu.memory_space<vmem>>, vector<1x16x16x8xf32>
    %40 = vector.shape_cast %39 : vector<1x16x16x8xf32> to vector<16x16x8xf32>
    %41 = vector.shape_cast %40 : vector<16x16x8xf32> to vector<256x8xf32>
    %42 = arith.truncf %41 : vector<256x8xf32> to vector<256x8xbf16>
    %c3 = arith.constant 3 : index
    %c0_26 = arith.constant 0 : index
    %c0_27 = arith.constant 0 : index
    %43 = vector.load %arg4[%c3, %c0_26, %c0_27] : memref<9x8x128xbf16, #tpu.memory_space<vmem>>, vector<1x8x128xbf16>
    %44 = vector.shape_cast %43 : vector<1x8x128xbf16> to vector<8x128xbf16>
    %cst_28 = arith.constant dense<0.000000e+00> : vector<256x128xf32>
    %45 = tpu.matmul %42, %44, %cst_28 {dimension_numbers = #tpu.dot_dimension_numbers<[1], [0], [0], [1], [0, 0, 1, 1], [], []>} : vector<256x8xbf16>, vector<8x128xbf16>, vector<256x128xf32> -> vector<256x128xf32>
    %46 = arith.addf %36, %45 : vector<256x128xf32>
    %c1_i32_29 = arith.constant 1 : i32
    %47 = arith.addi %5, %c1_i32_29 : i32
    %c0_30 = arith.constant 0 : index
    %48 = arith.index_cast %47 : i32 to index
    %c1_31 = arith.constant 1 : index
    %c0_32 = arith.constant 0 : index
    %49 = vector.load %arg3[%c0_30, %48, %c1_31, %c0_32] : memref<1x18x18x8xf32, #tpu.memory_space<vmem>>, vector<1x16x16x8xf32>
    %50 = vector.shape_cast %49 : vector<1x16x16x8xf32> to vector<16x16x8xf32>
    %51 = vector.shape_cast %50 : vector<16x16x8xf32> to vector<256x8xf32>
    %52 = arith.truncf %51 : vector<256x8xf32> to vector<256x8xbf16>
    %c4 = arith.constant 4 : index
    %c0_33 = arith.constant 0 : index
    %c0_34 = arith.constant 0 : index
    %53 = vector.load %arg4[%c4, %c0_33, %c0_34] : memref<9x8x128xbf16, #tpu.memory_space<vmem>>, vector<1x8x128xbf16>
    %54 = vector.shape_cast %53 : vector<1x8x128xbf16> to vector<8x128xbf16>
    %cst_35 = arith.constant dense<0.000000e+00> : vector<256x128xf32>
    %55 = tpu.matmul %52, %54, %cst_35 {dimension_numbers = #tpu.dot_dimension_numbers<[1], [0], [0], [1], [0, 0, 1, 1], [], []>} : vector<256x8xbf16>, vector<8x128xbf16>, vector<256x128xf32> -> vector<256x128xf32>
    %56 = arith.addf %46, %55 : vector<256x128xf32>
    %c1_i32_36 = arith.constant 1 : i32
    %57 = arith.addi %5, %c1_i32_36 : i32
    %c0_37 = arith.constant 0 : index
    %58 = arith.index_cast %57 : i32 to index
    %c2_38 = arith.constant 2 : index
    %c0_39 = arith.constant 0 : index
    %59 = vector.load %arg3[%c0_37, %58, %c2_38, %c0_39] : memref<1x18x18x8xf32, #tpu.memory_space<vmem>>, vector<1x16x16x8xf32>
    %60 = vector.shape_cast %59 : vector<1x16x16x8xf32> to vector<16x16x8xf32>
    %61 = vector.shape_cast %60 : vector<16x16x8xf32> to vector<256x8xf32>
    %62 = arith.truncf %61 : vector<256x8xf32> to vector<256x8xbf16>
    %c5 = arith.constant 5 : index
    %c0_40 = arith.constant 0 : index
    %c0_41 = arith.constant 0 : index
    %63 = vector.load %arg4[%c5, %c0_40, %c0_41] : memref<9x8x128xbf16, #tpu.memory_space<vmem>>, vector<1x8x128xbf16>
    %64 = vector.shape_cast %63 : vector<1x8x128xbf16> to vector<8x128xbf16>
    %cst_42 = arith.constant dense<0.000000e+00> : vector<256x128xf32>
    %65 = tpu.matmul %62, %64, %cst_42 {dimension_numbers = #tpu.dot_dimension_numbers<[1], [0], [0], [1], [0, 0, 1, 1], [], []>} : vector<256x8xbf16>, vector<8x128xbf16>, vector<256x128xf32> -> vector<256x128xf32>
    %66 = arith.addf %56, %65 : vector<256x128xf32>
    %c2_i32 = arith.constant 2 : i32
    %67 = arith.addi %5, %c2_i32 : i32
    %c0_43 = arith.constant 0 : index
    %68 = arith.index_cast %67 : i32 to index
    %c0_44 = arith.constant 0 : index
    %c0_45 = arith.constant 0 : index
    %69 = vector.load %arg3[%c0_43, %68, %c0_44, %c0_45] : memref<1x18x18x8xf32, #tpu.memory_space<vmem>>, vector<1x16x16x8xf32>
    %70 = vector.shape_cast %69 : vector<1x16x16x8xf32> to vector<16x16x8xf32>
    %71 = vector.shape_cast %70 : vector<16x16x8xf32> to vector<256x8xf32>
    %72 = arith.truncf %71 : vector<256x8xf32> to vector<256x8xbf16>
    %c6 = arith.constant 6 : index
    %c0_46 = arith.constant 0 : index
    %c0_47 = arith.constant 0 : index
    %73 = vector.load %arg4[%c6, %c0_46, %c0_47] : memref<9x8x128xbf16, #tpu.memory_space<vmem>>, vector<1x8x128xbf16>
    %74 = vector.shape_cast %73 : vector<1x8x128xbf16> to vector<8x128xbf16>
    %cst_48 = arith.constant dense<0.000000e+00> : vector<256x128xf32>
    %75 = tpu.matmul %72, %74, %cst_48 {dimension_numbers = #tpu.dot_dimension_numbers<[1], [0], [0], [1], [0, 0, 1, 1], [], []>} : vector<256x8xbf16>, vector<8x128xbf16>, vector<256x128xf32> -> vector<256x128xf32>
    %76 = arith.addf %66, %75 : vector<256x128xf32>
    %c2_i32_49 = arith.constant 2 : i32
    %77 = arith.addi %5, %c2_i32_49 : i32
    %c0_50 = arith.constant 0 : index
    %78 = arith.index_cast %77 : i32 to index
    %c1_51 = arith.constant 1 : index
    %c0_52 = arith.constant 0 : index
    %79 = vector.load %arg3[%c0_50, %78, %c1_51, %c0_52] : memref<1x18x18x8xf32, #tpu.memory_space<vmem>>, vector<1x16x16x8xf32>
    %80 = vector.shape_cast %79 : vector<1x16x16x8xf32> to vector<16x16x8xf32>
    %81 = vector.shape_cast %80 : vector<16x16x8xf32> to vector<256x8xf32>
    %82 = arith.truncf %81 : vector<256x8xf32> to vector<256x8xbf16>
    %c7 = arith.constant 7 : index
    %c0_53 = arith.constant 0 : index
    %c0_54 = arith.constant 0 : index
    %83 = vector.load %arg4[%c7, %c0_53, %c0_54] : memref<9x8x128xbf16, #tpu.memory_space<vmem>>, vector<1x8x128xbf16>
    %84 = vector.shape_cast %83 : vector<1x8x128xbf16> to vector<8x128xbf16>
    %cst_55 = arith.constant dense<0.000000e+00> : vector<256x128xf32>
    %85 = tpu.matmul %82, %84, %cst_55 {dimension_numbers = #tpu.dot_dimension_numbers<[1], [0], [0], [1], [0, 0, 1, 1], [], []>} : vector<256x8xbf16>, vector<8x128xbf16>, vector<256x128xf32> -> vector<256x128xf32>
    %86 = arith.addf %76, %85 : vector<256x128xf32>
    %c2_i32_56 = arith.constant 2 : i32
    %87 = arith.addi %5, %c2_i32_56 : i32
    %c0_57 = arith.constant 0 : index
    %88 = arith.index_cast %87 : i32 to index
    %c2_58 = arith.constant 2 : index
    %c0_59 = arith.constant 0 : index
    %89 = vector.load %arg3[%c0_57, %88, %c2_58, %c0_59] : memref<1x18x18x8xf32, #tpu.memory_space<vmem>>, vector<1x16x16x8xf32>
    %90 = vector.shape_cast %89 : vector<1x16x16x8xf32> to vector<16x16x8xf32>
    %91 = vector.shape_cast %90 : vector<16x16x8xf32> to vector<256x8xf32>
    %92 = arith.truncf %91 : vector<256x8xf32> to vector<256x8xbf16>
    %c8 = arith.constant 8 : index
    %c0_60 = arith.constant 0 : index
    %c0_61 = arith.constant 0 : index
    %93 = vector.load %arg4[%c8, %c0_60, %c0_61] : memref<9x8x128xbf16, #tpu.memory_space<vmem>>, vector<1x8x128xbf16>
    %94 = vector.shape_cast %93 : vector<1x8x128xbf16> to vector<8x128xbf16>
    %cst_62 = arith.constant dense<0.000000e+00> : vector<256x128xf32>
    %95 = tpu.matmul %92, %94, %cst_62 {dimension_numbers = #tpu.dot_dimension_numbers<[1], [0], [0], [1], [0, 0, 1, 1], [], []>} : vector<256x8xbf16>, vector<8x128xbf16>, vector<256x128xf32> -> vector<256x128xf32>
    %96 = arith.addf %86, %95 : vector<256x128xf32>
    %c0_63 = arith.constant 0 : index
    %c0_64 = arith.constant 0 : index
    %97 = vector.load %arg5[%c0_63, %c0_64] : memref<256x128xf32, #tpu.memory_space<vmem>>, vector<256x128xf32>
    tpu.vector_store %arg5[%c0_63, %c0_64], %96 {strides = array<i32>} : memref<256x128xf32, #tpu.memory_space<vmem>>, vector<256x128xf32>,
    %c0_65 = arith.constant 0 : index
    %c0_66 = arith.constant 0 : index
    %98 = vector.load %arg6[%c0_65, %c0_66] : memref<1x128xf32, #tpu.memory_space<vmem>>, vector<1x128xf32>
    %cst_67 = arith.constant dense<0.000000e+00> : vector<128xf32>
    %99 = vector.multi_reduction <add>, %96, %cst_67 [0] : vector<256x128xf32> to vector<128xf32>
    %100 = vector.shape_cast %99 : vector<128xf32> to vector<1x128xf32>
    %101 = arith.addf %98, %100 : vector<1x128xf32>
    %c0_68 = arith.constant 0 : index
    %c0_69 = arith.constant 0 : index
    %102 = vector.load %arg6[%c0_68, %c0_69] : memref<1x128xf32, #tpu.memory_space<vmem>>, vector<1x128xf32>
    tpu.vector_store %arg6[%c0_68, %c0_69], %101 {strides = array<i32>} : memref<1x128xf32, #tpu.memory_space<vmem>>, vector<1x128xf32>,
    %c0_70 = arith.constant 0 : index
    %c0_71 = arith.constant 0 : index
    %103 = vector.load %arg7[%c0_70, %c0_71] : memref<1x128xf32, #tpu.memory_space<vmem>>, vector<1x128xf32>
    %104 = arith.mulf %96, %96 : vector<256x128xf32>
    %cst_72 = arith.constant dense<0.000000e+00> : vector<128xf32>
    %105 = vector.multi_reduction <add>, %104, %cst_72 [0] : vector<256x128xf32> to vector<128xf32>
    %106 = vector.shape_cast %105 : vector<128xf32> to vector<1x128xf32>
    %107 = arith.addf %103, %106 : vector<1x128xf32>
    %c0_73 = arith.constant 0 : index
    %c0_74 = arith.constant 0 : index
    %108 = vector.load %arg7[%c0_73, %c0_74] : memref<1x128xf32, #tpu.memory_space<vmem>>, vector<1x128xf32>
    tpu.vector_store %arg7[%c0_73, %c0_74], %107 {strides = array<i32>} : memref<1x128xf32, #tpu.memory_space<vmem>>, vector<1x128xf32>,
    return
  }
  func.func @transform_0(%arg0: i32, %arg1: i32, %arg2: i32) -> (i32, i32, i32, i32) {
    %c0_i32 = arith.constant 0 : i32
    %c0_i32_0 = arith.constant 0 : i32
    %c0_i32_1 = arith.constant 0 : i32
    %c0_i32_2 = arith.constant 0 : i32
    return %arg1, %c0_i32, %c0_i32_0, %c0_i32_1 : i32, i32, i32, i32
  }
  func.func @transform_1(%arg0: i32, %arg1: i32, %arg2: i32) -> (i32, i32, i32) {
    %c0_i32 = arith.constant 0 : i32
    %c0_i32_0 = arith.constant 0 : i32
    %c0_i32_1 = arith.constant 0 : i32
    return %c0_i32, %c0_i32_0, %arg0 : i32, i32, i32
  }
  func.func @transform_2(%arg0: i32, %arg1: i32, %arg2: i32) -> (i32, i32) {
    %c1_i32 = arith.constant 1 : i32
    %0 = arith.muli %arg1, %c1_i32 : i32
    %1 = arith.addi %0, %arg2 : i32
    %c0_i32 = arith.constant 0 : i32
    return %1, %arg0 : i32, i32
  }
  func.func @transform_3(%arg0: i32, %arg1: i32, %arg2: i32) -> (i32, i32) {
    %c0_i32 = arith.constant 0 : i32
    %c0_i32_0 = arith.constant 0 : i32
    return %c0_i32, %arg0 : i32, i32
  }
  func.func @transform_4(%arg0: i32, %arg1: i32, %arg2: i32) -> (i32, i32) {
    %c0_i32 = arith.constant 0 : i32
    %c0_i32_0 = arith.constant 0 : i32
    return %c0_i32, %arg0 : i32, i32
  }
}

</mosaic_0001>

<bundles_post_ra>
// kernel: cbr_forward.3
= control target key start
LH: loop header
LB: loop body
LE: loop exit
PB: predicated region body
PF: predicated region fallthrough
CT: control target
= control target key end

     0   :  { %s829_s0 = inlined_call_operand.vmem [shape: f32[512,128], index: 0, kind: input, shape index: {}]   ;;  %s830_s1 = inlined_call_operand.vmem [shape: f32[1,128], index: 1, kind: input, shape index: {}]   ;;  %s831_s2 = inlined_call_operand.vmem [shape: f32[1,128], index: 2, kind: input, shape index: {}]   ;;  %s832_s3 = inlined_call_operand.vmem [shape: f32[512,128], index: 3, kind: output, shape index: {}]  }
   0x1   :  { %v14_v0 = vld [vmem:[%s829_s0] sm:$0xff]  ;;  %v15_v3 = vld [vmem:[%s829_s0 + $0x8] sm:$0xff]  ;;  %v16_v6 = vld [vmem:[%s829_s0 + $0x10] sm:$0xff] }
   0x2   :  { %v310_v1 = vld [vmem:[%s830_s1] ss:$0 sm:$0xff]  ;;  %v17_v7 = vld [vmem:[%s829_s0 + $0x18] sm:$0xff]  ;;  %v19_v12 = vld [vmem:[%s829_s0 + $0x28] sm:$0xff] }
   0x3   :  { %v315_v2 = vld [vmem:[%s831_s2] ss:$0 sm:$0xff]  ;;  %v82_v4 = vmul.f32 %v310_v1, %v14_v0  ;;  %v83_v5 = vmul.f32 %v310_v1, %v15_v3  ;;  %v84_v9 = vmul.f32 %v310_v1, %v16_v6  ;;  %v85_v10 = vmul.f32 %v310_v1, %v17_v7  ;;  %v20_v13 = vld [vmem:[%s829_s0 + $0x30] sm:$0xff]  ;;  %v21_v14 = vld [vmem:[%s829_s0 + $0x38] sm:$0xff] }
   0x4   :  { %v18_v8 = vld [vmem:[%s829_s0 + $0x20] sm:$0xff]  ;;  %v87_v17 = vmul.f32 %v310_v1, %v19_v12  ;;  %v88_v18 = vmul.f32 %v310_v1, %v20_v13  ;;  %v23_v20 = vld [vmem:[%s829_s0 + $0x48] sm:$0xff]  ;;  %v89_v23 = vmul.f32 %v310_v1, %v21_v14  ;;  %v24_v24 = vld [vmem:[%s829_s0 + $0x50] sm:$0xff] }
   0x5   :  { %v86_v11 = vmul.f32 %v310_v1, %v18_v8  ;;  %v150_v15 = vadd.f32 %v315_v2, %v82_v4  ;;  %v151_v16 = vadd.f32 %v315_v2, %v83_v5  ;;  %v22_v19 = vld [vmem:[%s829_s0 + $0x40] sm:$0xff]  ;;  %v152_v21 = vadd.f32 %v315_v2, %v84_v9  ;;  %v25_v27 = vld [vmem:[%s829_s0 + $0x58] sm:$0xff]  ;;  %v27_v33 = vld [vmem:[%s829_s0 + $0x68] sm:$0xff] }
   0x6   :  { %v153_v22 = vadd.f32 %v315_v2, %v85_v10  ;;  %v90_v26 = vmul.f32 %v310_v1, %v22_v19  ;;  %v155_v28 = vadd.f32 %v315_v2, %v87_v17  ;;  %v91_v29 = vmul.f32 %v310_v1, %v23_v20  ;;  %v26_v30 = vld [vmem:[%s829_s0 + $0x60] sm:$0xff]  ;;  %v28_v36 = vld [vmem:[%s829_s0 + $0x70] sm:$0xff]  ;;  %v29_v39 = vld [vmem:[%s829_s0 + $0x78] sm:$0xff] }
   0x7   :  { %214 = vst [vmem:[%s832_s3] sm:$0xff] %v150_v15  ;;  %v154_v25 = vadd.f32 %v315_v2, %v86_v11  ;;  %v156_v31 = vadd.f32 %v315_v2, %v88_v18  ;;  %v92_v32 = vmul.f32 %v310_v1, %v24_v24  ;;  %v157_v34 = vadd.f32 %v315_v2, %v89_v23  ;;  %v30_v42 = vld [vmem:[%s829_s0 + $0x80] sm:$0xff]  ;;  %v31_v45 = vld [vmem:[%s829_s0 + $0x88] sm:$0xff]  ;;  %v32_v48 = vld [vmem:[%s829_s0 + $0x90] sm:$0xff] }
   0x8   :  { %215 = vst [vmem:[%s832_s3 + $0x8] sm:$0xff] %v151_v16  ;;  %v93_v35 = vmul.f32 %v310_v1, %v25_v27  ;;  %v158_v37 = vadd.f32 %v315_v2, %v90_v26  ;;  %v94_v38 = vmul.f32 %v310_v1, %v26_v30  ;;  %v159_v40 = vadd.f32 %v315_v2, %v91_v29  ;;  %v33_v51 = vld [vmem:[%s829_s0 + $0x98] sm:$0xff]  ;;  %v34_v54 = vld [vmem:[%s829_s0 + $0xa0] sm:$0xff]  ;;  %v35_v57 = vld [vmem:[%s829_s0 + $0xa8] sm:$0xff] }
   0x9   :  { %216 = vst [vmem:[%s832_s3 + $0x10] sm:$0xff] %v152_v21  ;;  %v95_v41 = vmul.f32 %v310_v1, %v27_v33  ;;  %v160_v43 = vadd.f32 %v315_v2, %v92_v32  ;;  %v96_v44 = vmul.f32 %v310_v1, %v28_v36  ;;  %v97_v47 = vmul.f32 %v310_v1, %v29_v39  ;;  %v36_v60 = vld [vmem:[%s829_s0 + $0xb0] sm:$0xff]  ;;  %v37_v63 = vld [vmem:[%s829_s0 + $0xb8] sm:$0xff]  ;;  %v38_v4 = vld [vmem:[%s829_s0 + $0xc0] sm:$0xff] }
   0xa   :  { %217 = vst [vmem:[%s832_s3 + $0x18] sm:$0xff] %v153_v22  ;;  %v161_v46 = vadd.f32 %v315_v2, %v93_v35  ;;  %v162_v49 = vadd.f32 %v315_v2, %v94_v38  ;;  %v98_v50 = vmul.f32 %v310_v1, %v30_v42  ;;  %v99_v53 = vmul.f32 %v310_v1, %v31_v45  ;;  %v39_v7 = vld [vmem:[%s829_s0 + $0xc8] sm:$0xff]  ;;  %v40_v10 = vld [vmem:[%s829_s0 + $0xd0] sm:$0xff]  ;;  %v41_v13 = vld [vmem:[%s829_s0 + $0xd8] sm:$0xff] }
   0xb   :  { %218 = vst [vmem:[%s832_s3 + $0x20] sm:$0xff] %v154_v25  ;;  %v163_v52 = vadd.f32 %v315_v2, %v95_v41  ;;  %v164_v55 = vadd.f32 %v315_v2, %v96_v44  ;;  %v100_v56 = vmul.f32 %v310_v1, %v32_v48  ;;  %v165_v58 = vadd.f32 %v315_v2, %v97_v47  ;;  %v42_v16 = vld [vmem:[%s829_s0 + $0xe0] sm:$0xff]  ;;  %v43_v19 = vld [vmem:[%s829_s0 + $0xe8] sm:$0xff]  ;;  %v44_v22 = vld [vmem:[%s829_s0 + $0xf0] sm:$0xff] }
   0xc   :  { %219 = vst [vmem:[%s832_s3 + $0x28] sm:$0xff] %v155_v28  ;;  %v101_v59 = vmul.f32 %v310_v1, %v33_v51  ;;  %v166_v61 = vadd.f32 %v315_v2, %v98_v50  ;;  %v102_v62 = vmul.f32 %v310_v1, %v34_v54  ;;  %v167_v0 = vadd.f32 %v315_v2, %v99_v53  ;;  %v45_v25 = vld [vmem:[%s829_s0 + $0xf8] sm:$0xff]  ;;  %v46_v28 = vld [vmem:[%s829_s0 + $0x100] sm:$0xff]  ;;  %v51_v44 = vld [vmem:[%s829_s0 + $0x128] sm:$0xff] }
   0xd   :  { %220 = vst [vmem:[%s832_s3 + $0x30] sm:$0xff] %v156_v31  ;;  %v103_v3 = vmul.f32 %v310_v1, %v35_v57  ;;  %v168_v5 = vadd.f32 %v315_v2, %v100_v56  ;;  %v104_v6 = vmul.f32 %v310_v1, %v36_v60  ;;  %v105_v9 = vmul.f32 %v310_v1, %v37_v63  ;;  %v47_v31 = vld [vmem:[%s829_s0 + $0x108] sm:$0xff]  ;;  %v77_v41 = vld [vmem:[%s829_s0 + $0x1f8] sm:$0xff]  ;;  %v52_v47 = vld [vmem:[%s829_s0 + $0x130] sm:$0xff] }
   0xe   :  { %221 = vst [vmem:[%s832_s3 + $0x38] sm:$0xff] %v157_v34  ;;  %v169_v8 = vadd.f32 %v315_v2, %v101_v59  ;;  %v170_v11 = vadd.f32 %v315_v2, %v102_v62  ;;  %v106_v12 = vmul.f32 %v310_v1, %v38_v4  ;;  %v107_v15 = vmul.f32 %v310_v1, %v39_v7  ;;  %v48_v34 = vld [vmem:[%s829_s0 + $0x110] sm:$0xff]  ;;  %v53_v51 = vld [vmem:[%s829_s0 + $0x138] sm:$0xff]  ;;  %v54_v54 = vld [vmem:[%s829_s0 + $0x140] sm:$0xff] }
   0xf   :  { %222 = vst [vmem:[%s832_s3 + $0x40] sm:$0xff] %v158_v37  ;;  %v171_v14 = vadd.f32 %v315_v2, %v103_v3  ;;  %v172_v17 = vadd.f32 %v315_v2, %v104_v6  ;;  %v108_v18 = vmul.f32 %v310_v1, %v40_v10  ;;  %v173_v20 = vadd.f32 %v315_v2, %v105_v9  ;;  %v49_v37 = vld [vmem:[%s829_s0 + $0x118] sm:$0xff] }
  0x10   :  { %223 = vst [vmem:[%s832_s3 + $0x48] sm:$0xff] %v159_v40  ;;  %v109_v21 = vmul.f32 %v310_v1, %v41_v13  ;;  %v174_v23 = vadd.f32 %v315_v2, %v106_v12  ;;  %v110_v24 = vmul.f32 %v310_v1, %v42_v16  ;;  %v175_v26 = vadd.f32 %v315_v2, %v107_v15  ;;  %v50_v40 = vld [vmem:[%s829_s0 + $0x120] sm:$0xff] }
  0x11   :  { %224 = vst [vmem:[%s832_s3 + $0x50] sm:$0xff] %v160_v43  ;;  %v111_v27 = vmul.f32 %v310_v1, %v43_v19  ;;  %v176_v29 = vadd.f32 %v315_v2, %v108_v18  ;;  %v112_v30 = vmul.f32 %v310_v1, %v44_v22  ;;  %v113_v33 = vmul.f32 %v310_v1, %v45_v25 }
  0x12   :  { %225 = vst [vmem:[%s832_s3 + $0x58] sm:$0xff] %v161_v46  ;;  %v177_v32 = vadd.f32 %v315_v2, %v109_v21  ;;  %v178_v35 = vadd.f32 %v315_v2, %v110_v24  ;;  %v114_v36 = vmul.f32 %v310_v1, %v46_v28  ;;  %v115_v39 = vmul.f32 %v310_v1, %v47_v31 }
  0x13   :  { %226 = vst [vmem:[%s832_s3 + $0x60] sm:$0xff] %v162_v49  ;;  %v179_v38 = vadd.f32 %v315_v2, %v111_v27  ;;  %v180_v42 = vadd.f32 %v315_v2, %v112_v30  ;;  %v116_v43 = vmul.f32 %v310_v1, %v48_v34  ;;  %v181_v45 = vadd.f32 %v315_v2, %v113_v33 }
  0x14   :  { %227 = vst [vmem:[%s832_s3 + $0x68] sm:$0xff] %v163_v52  ;;  %v117_v46 = vmul.f32 %v310_v1, %v49_v37  ;;  %v145_v48 = vmul.f32 %v310_v1, %v77_v41  ;;  %v182_v49 = vadd.f32 %v315_v2, %v114_v36  ;;  %v118_v50 = vmul.f32 %v310_v1, %v50_v40  ;;  %v70_v41 = vld [vmem:[%s829_s0 + $0x1c0] sm:$0xff] }
  0x15   :  { %228 = vst [vmem:[%s832_s3 + $0x70] sm:$0xff] %v164_v55  ;;  %v183_v52 = vadd.f32 %v315_v2, %v115_v39  ;;  %v119_v53 = vmul.f32 %v310_v1, %v51_v44  ;;  %v184_v56 = vadd.f32 %v315_v2, %v116_v43  ;;  %v120_v57 = vmul.f32 %v310_v1, %v52_v47  ;;  %v71_v44 = vld [vmem:[%s829_s0 + $0x1c8] sm:$0xff]  ;;  %v72_v47 = vld [vmem:[%s829_s0 + $0x1d0] sm:$0xff] }
  0x16   :  { %229 = vst [vmem:[%s832_s3 + $0x78] sm:$0xff] %v165_v58  ;;  %v604_v55 = vadd.f32 %v315_v2, %v145_v48  ;;  %v55_v58 = vld [vmem:[%s829_s0 + $0x148] sm:$0xff]  ;;  %v185_v59 = vadd.f32 %v315_v2, %v117_v46  ;;  %v121_v60 = vmul.f32 %v310_v1, %v53_v51  ;;  %v186_v62 = vadd.f32 %v315_v2, %v118_v50  ;;  %v73_v50 = vld [vmem:[%s829_s0 + $0x1d8] sm:$0xff] }
  0x17   :  { %230 = vst [vmem:[%s832_s3 + $0x80] sm:$0xff] %v166_v61  ;;  %v56_v61 = vld [vmem:[%s829_s0 + $0x150] sm:$0xff]  ;;  %v122_v63 = vmul.f32 %v310_v1, %v54_v54  ;;  %v187_v3 = vadd.f32 %v315_v2, %v119_v53  ;;  %v123_v4 = vmul.f32 %v310_v1, %v55_v58  ;;  %v188_v6 = vadd.f32 %v315_v2, %v120_v57  ;;  %v74_v53 = vld [vmem:[%s829_s0 + $0x1e0] sm:$0xff]  ;;  %v75_v57 = vld [vmem:[%s829_s0 + $0x1e8] sm:$0xff] }
  0x18   :  { %231 = vst [vmem:[%s832_s3 + $0x88] sm:$0xff] %v167_v0  ;;  %v57_v0 = vld [vmem:[%s829_s0 + $0x158] sm:$0xff]  ;;  %v124_v7 = vmul.f32 %v310_v1, %v56_v61  ;;  %v189_v9 = vadd.f32 %v315_v2, %v121_v60  ;;  %v76_v60 = vld [vmem:[%s829_s0 + $0x1f0] sm:$0xff] }
  0x19   :  { %232 = vst [vmem:[%s832_s3 + $0x90] sm:$0xff] %v168_v5  ;;  %v58_v5 = vld [vmem:[%s829_s0 + $0x160] sm:$0xff]  ;;  %v125_v10 = vmul.f32 %v310_v1, %v57_v0  ;;  %v190_v12 = vadd.f32 %v315_v2, %v122_v63  ;;  %v191_v15 = vadd.f32 %v315_v2, %v123_v4  ;;  %v143_v0 = vmul.f32 %v310_v1, %v75_v57 }
  0x1a   :  { %233 = vst [vmem:[%s832_s3 + $0x98] sm:$0xff] %v169_v8  ;;  %v59_v8 = vld [vmem:[%s829_s0 + $0x168] sm:$0xff]  ;;  %v126_v13 = vmul.f32 %v310_v1, %v58_v5  ;;  %v192_v18 = vadd.f32 %v315_v2, %v124_v7  ;;  %v144_v4 = vmul.f32 %v310_v1, %v76_v60 }
  0x1b   :  { %234 = vst [vmem:[%s832_s3 + $0xa0] sm:$0xff] %v170_v11  ;;  %v60_v11 = vld [vmem:[%s829_s0 + $0x170] sm:$0xff]  ;;  %v127_v16 = vmul.f32 %v310_v1, %v59_v8  ;;  %v193_v21 = vadd.f32 %v315_v2, %v125_v10  ;;  %v211_v7 = vadd.f32 %v315_v2, %v143_v0 }
  0x1c   :  { %235 = vst [vmem:[%s832_s3 + $0xa8] sm:$0xff] %v171_v14  ;;  %v61_v14 = vld [vmem:[%s829_s0 + $0x178] sm:$0xff]  ;;  %v128_v19 = vmul.f32 %v310_v1, %v60_v11  ;;  %v194_v24 = vadd.f32 %v315_v2, %v126_v13 }
  0x1d   :  { %236 = vst [vmem:[%s832_s3 + $0xb0] sm:$0xff] %v172_v17  ;;  %v62_v17 = vld [vmem:[%s829_s0 + $0x180] sm:$0xff]  ;;  %v129_v22 = vmul.f32 %v310_v1, %v61_v14  ;;  %v195_v27 = vadd.f32 %v315_v2, %v127_v16 }
  0x1e   :  { %237 = vst [vmem:[%s832_s3 + $0xb8] sm:$0xff] %v173_v20  ;;  %v63_v20 = vld [vmem:[%s829_s0 + $0x188] sm:$0xff]  ;;  %v130_v25 = vmul.f32 %v310_v1, %v62_v17  ;;  %v196_v30 = vadd.f32 %v315_v2, %v128_v19 }
  0x1f   :  { %238 = vst [vmem:[%s832_s3 + $0xc0] sm:$0xff] %v174_v23  ;;  %v64_v23 = vld [vmem:[%s829_s0 + $0x190] sm:$0xff]  ;;  %v131_v28 = vmul.f32 %v310_v1, %v63_v20  ;;  %v197_v33 = vadd.f32 %v315_v2, %v129_v22 }
  0x20   :  { %239 = vst [vmem:[%s832_s3 + $0xc8] sm:$0xff] %v175_v26  ;;  %v65_v26 = vld [vmem:[%s829_s0 + $0x198] sm:$0xff]  ;;  %v132_v31 = vmul.f32 %v310_v1, %v64_v23  ;;  %v198_v36 = vadd.f32 %v315_v2, %v130_v25 }
  0x21   :  { %240 = vst [vmem:[%s832_s3 + $0xd0] sm:$0xff] %v176_v29  ;;  %v66_v29 = vld [vmem:[%s829_s0 + $0x1a0] sm:$0xff]  ;;  %v133_v34 = vmul.f32 %v310_v1, %v65_v26  ;;  %v199_v39 = vadd.f32 %v315_v2, %v131_v28 }
  0x22   :  { %241 = vst [vmem:[%s832_s3 + $0xd8] sm:$0xff] %v177_v32  ;;  %v67_v32 = vld [vmem:[%s829_s0 + $0x1a8] sm:$0xff]  ;;  %v134_v37 = vmul.f32 %v310_v1, %v66_v29 }
  0x23   :  { %242 = vst [vmem:[%s832_s3 + $0xe0] sm:$0xff] %v178_v35  ;;  %v68_v35 = vld [vmem:[%s829_s0 + $0x1b0] sm:$0xff]  ;;  %v135_v40 = vmul.f32 %v310_v1, %v67_v32 }
  0x24   :  { %243 = vst [vmem:[%s832_s3 + $0xe8] sm:$0xff] %v179_v38  ;;  %v69_v38 = vld [vmem:[%s829_s0 + $0x1b8] sm:$0xff]  ;;  %v136_v43 = vmul.f32 %v310_v1, %v68_v35  ;;  %v202_v48 = vadd.f32 %v315_v2, %v134_v37 }
  0x25   :  { %244 = vst [vmem:[%s832_s3 + $0xf0] sm:$0xff] %v180_v42  ;;  %v200_v42 = vadd.f32 %v315_v2, %v132_v31  ;;  %v137_v46 = vmul.f32 %v310_v1, %v69_v38  ;;  %v203_v51 = vadd.f32 %v315_v2, %v135_v40 }
  0x26   :  { %245 = vst [vmem:[%s832_s3 + $0xf8] sm:$0xff] %v181_v45  ;;  %v201_v45 = vadd.f32 %v315_v2, %v133_v34  ;;  %v204_v54 = vadd.f32 %v315_v2, %v136_v43 }
  0x27   :  { %246 = vst [vmem:[%s832_s3 + $0x100] sm:$0xff] %v182_v49  ;;  %v138_v49 = vmul.f32 %v310_v1, %v70_v41  ;;  %v205_v58 = vadd.f32 %v315_v2, %v137_v46 }
  0x28   :  { %247 = vst [vmem:[%s832_s3 + $0x108] sm:$0xff] %v183_v52  ;;  %v139_v52 = vmul.f32 %v310_v1, %v71_v44 }
  0x29   :  { %248 = vst [vmem:[%s832_s3 + $0x110] sm:$0xff] %v184_v56  ;;  %v140_v56 = vmul.f32 %v310_v1, %v72_v47  ;;  %v206_v61 = vadd.f32 %v315_v2, %v138_v49 }
  0x2a   :  { %249 = vst [vmem:[%s832_s3 + $0x118] sm:$0xff] %v185_v59  ;;  %v141_v59 = vmul.f32 %v310_v1, %v73_v50  ;;  %v207_v63 = vadd.f32 %v315_v2, %v139_v52 }
  0x2b   :  { %250 = vst [vmem:[%s832_s3 + $0x120] sm:$0xff] %v186_v62  ;;  %v142_v62 = vmul.f32 %v310_v1, %v74_v53  ;;  %v212_v1 = vadd.f32 %v315_v2, %v144_v4 }
  0x2c   :  { %251 = vst [vmem:[%s832_s3 + $0x128] sm:$0xff] %v187_v3  ;;  %v208_v3 = vadd.f32 %v315_v2, %v140_v56  ;;  %v209_v5 = vadd.f32 %v315_v2, %v141_v59 }
  0x2d   :  { %252 = vst [vmem:[%s832_s3 + $0x130] sm:$0xff] %v188_v6  ;;  %v210_v6 = vadd.f32 %v315_v2, %v142_v62 }
  0x2e   :  { %253 = vst [vmem:[%s832_s3 + $0x138] sm:$0xff] %v189_v9 }
  0x2f   :  { %254 = vst [vmem:[%s832_s3 + $0x140] sm:$0xff] %v190_v12 }
  0x30   :  { %255 = vst [vmem:[%s832_s3 + $0x148] sm:$0xff] %v191_v15 }
  0x31   :  { %256 = vst [vmem:[%s832_s3 + $0x150] sm:$0xff] %v192_v18 }
  0x32   :  { %257 = vst [vmem:[%s832_s3 + $0x158] sm:$0xff] %v193_v21 }
  0x33   :  { %258 = vst [vmem:[%s832_s3 + $0x160] sm:$0xff] %v194_v24 }
  0x34   :  { %259 = vst [vmem:[%s832_s3 + $0x168] sm:$0xff] %v195_v27 }
  0x35   :  { %260 = vst [vmem:[%s832_s3 + $0x170] sm:$0xff] %v196_v30 }
  0x36   :  { %261 = vst [vmem:[%s832_s3 + $0x178] sm:$0xff] %v197_v33 }
  0x37   :  { %262 = vst [vmem:[%s832_s3 + $0x180] sm:$0xff] %v198_v36 }
  0x38   :  { %263 = vst [vmem:[%s832_s3 + $0x188] sm:$0xff] %v199_v39 }
  0x39   :  { %264 = vst [vmem:[%s832_s3 + $0x190] sm:$0xff] %v200_v42 }
  0x3a   :  { %265 = vst [vmem:[%s832_s3 + $0x198] sm:$0xff] %v201_v45 }
  0x3b   :  { %266 = vst [vmem:[%s832_s3 + $0x1a0] sm:$0xff] %v202_v48 }
  0x3c   :  { %267 = vst [vmem:[%s832_s3 + $0x1a8] sm:$0xff] %v203_v51 }
  0x3d   :  { %268 = vst [vmem:[%s832_s3 + $0x1b0] sm:$0xff] %v204_v54 }
  0x3e   :  { %269 = vst [vmem:[%s832_s3 + $0x1b8] sm:$0xff] %v205_v58 }
  0x3f   :  { %270 = vst [vmem:[%s832_s3 + $0x1c0] sm:$0xff] %v206_v61 }
  0x40   :  { %271 = vst [vmem:[%s832_s3 + $0x1c8] sm:$0xff] %v207_v63 }
  0x41   :  { %272 = vst [vmem:[%s832_s3 + $0x1d0] sm:$0xff] %v208_v3 }
  0x42   :  { %273 = vst [vmem:[%s832_s3 + $0x1d8] sm:$0xff] %v209_v5 }
  0x43   :  { %274 = vst [vmem:[%s832_s3 + $0x1e0] sm:$0xff] %v210_v6 }
  0x44   :  { %275 = vst [vmem:[%s832_s3 + $0x1e8] sm:$0xff] %v211_v7 }
  0x45   :  { %276 = vst [vmem:[%s832_s3 + $0x1f0] sm:$0xff] %v212_v1 }
  0x46   :  { %277 = vst [vmem:[%s832_s3 + $0x1f8] sm:$0xff] %v604_v55 }

// kernel: cbr_forward.2
= control target key start
LH: loop header
LB: loop body
LE: loop exit
PB: predicated region body
PF: predicated region fallthrough
CT: control target
= control target key end

     0   :  { %s2950_s15 = smov 0   ;;  %s2952_s16 = smov 0   ;;  %s3748_s0 = inlined_call_operand.vmem [shape: f32[2,18,18,8], index: 0, kind: input, shape index: {}]   ;;  %s3749_s1 = inlined_call_operand.vmem [shape: bf16[9,8,128], index: 1, kind: input, shape index: {}]   ;;  %s3750_s2 = inlined_call_operand.vmem [shape: f32[512,128], index: 2, kind: output, shape index: {0}]   ;;  %s3751_s3 = inlined_call_operand.vmem [shape: f32[1,128], index: 3, kind: output, shape index: {1}]   ;;  %s3752_s4 = inlined_call_operand.vmem [shape: f32[1,128], index: 4, kind: output, shape index: {2}]  }
   0x1   :  { %s2954_s17 = smov 0  }
   0x2 LB: > { %s30_s18 = sadd.s32 1, %s2918_s16  ;;  %p2517_p0 = scmp.ge.s32.totalorder %s2922_s17, 1  ;;  %s2922_s17 = sphi %s2954_s17, %s15_s17   ;;  %s2918_s16 = sphi %s2952_s16, %s3796_s16   ;;  %s2914_s15 = sphi %s2950_s15, %s3795_s15  }
   0x3   : > { %p32_p1 = scmp.ge.s32.totalorder %s30_s18, 2  ;;  %p199_p2 = scmp.lt.s32.totalorder %s2922_s17, 3 }
   0x5   : > { %s3798_s18 = smov (%p32_p1, %s30_s18), 0  ;;  %p200_p3 = pnand %p2517_p0, %p199_p2 }
   0x7   : > { %203 = sbr.rel (%p200_p3) target bundleno = 751 (0x2ef), region = 28 }
   0xc   : > { %p239_p4 = scmp.lt.s32.totalorder %s2914_s15, 1  ;;  %s2519_s19 = sshll.u32 %s2914_s15, 5 }
   0xd   : > { %p250_p5 = scmp.lt.s32.totalorder %s2519_s19, 63  ;;  %p266_p6 = scmp.eq.s32.totalorder %s2914_s15, 0 }
   0xe   : > { %s3800_s15 = smov (!%p239_p4, %s2914_s15), 1  ;;  %v2924_v0 = vmov (%p266_p6), 0.0  }
   0xf   : > { %s3802_s19 = smov (!%p250_p5, %s2519_s19), 63  ;;  %s2874_s20 = smul.u32 432, %s3800_s15  ;;  %272 = vst [vmem:[%s3751_s3] sm:$0x1] (%p266_p6), %v2924_v0 }
  0x10   : > { %s2520_s21 = sshll.u32 %s3802_s19, 3  ;;  %271 = sbr.rel (!%p266_p6) target bundleno = 21 (0x15), region = 32  ;;  %273 = vst [vmem:[%s3752_s4] sm:$0x1] (%p266_p6), %v2924_v0 }
  0x11   : > { %s2971_s24 = scalar_lea.vmem %s3748_s0, %s2874_s20  ;;  %s2976_s27 = scalar_lea.vmem %s3750_s2, %s2520_s21 }
  0x15 PF: > { %v2522_v1 = vld [vmem:[%s3749_s1 + $0x4] sm:$0xf]  ;;  %vm425_vm0 = vcmask 1043456   ;;  %v335_v3 = vld [vmem:[%s2971_s24 + $0x69] sm:$0xff]  ;;  %vm376_vm1 = vcmask 64512   ;;  %v336_v23 = vld [vmem:[%s2971_s24 + $0x79] sm:$0xff] }
  0x16   : > { %v334_v2 = vld [vmem:[%s2971_s24 + $0x61] sm:$0xff]  ;;  %v427_v4 = vsel %vm425_vm0, %v2522_v1, 0  ;;  %v343_v7 = vld [vmem:[%s2971_s24 + $0xc9] sm:$0xff]  ;;  %v344_v25 = vld [vmem:[%s2971_s24 + $0xd9] sm:$0xff] }
  0x17   : > { %v2990_v5 = vpack.c.bf16 %v335_v3, %v334_v2  ;;  %v342_v6 = vld [vmem:[%s2971_s24 + $0xc1] sm:$0xff]  ;;  %2871 = vmatpush.bf16.msra.mxu1 %v427_v4  ;;  %2872 = vmatpush.bf16.msra.mxu2 %v427_v4  ;;  %v351_v10 = vld [vmem:[%s2971_s24 + $0x129] sm:$0xff]  ;;  %v352_v27 = vld [vmem:[%s2971_s24 + $0x139] sm:$0xff] }
  0x18   : > { %v350_v8 = vld [vmem:[%s2971_s24 + $0x121] sm:$0xff]  ;;  %v2995_v9 = vpack.c.bf16 %v343_v7, %v342_v6  ;;  %2873 = vmatpush.bf16.msra.mxu3 %v427_v4  ;;  %436 = vmatpush.bf16.msra.mxu0 %v427_v4  ;;  %v327_v15 = vld [vmem:[%s2971_s24 + $0x9] sm:$0xff]  ;;  %v328_v29 = vld [vmem:[%s2971_s24 + $0x19] sm:$0xff] }
  0x19   : > { %v2555_v11 = vld [vmem:[%s3749_s1 + $0x8] sm:$0xf]  ;;  %v3002_v13 = vpack.c.bf16 %v351_v10, %v350_v8  ;;  %v2604_v16 = vld [vmem:[%s3749_s1 + $0xc] sm:$0xf]  ;;  %v325_v17 = vld [vmem:[%s3749_s1] sm:$0xf] }
  0x1a   : > { %v326_v12 = vld [vmem:[%s2971_s24 + $0x1] sm:$0xff]  ;;  %v757_v14 = vsel %vm425_vm0, %v2555_v11, 0  ;;  %v982_v19 = vsel %vm425_vm0, %v2604_v16, 0  ;;  %v567_v20 = vsel %vm425_vm0, %v325_v17, 0  ;;  %v2653_v21 = vld [vmem:[%s3749_s1 + $0x10] sm:$0xf]  ;;  %2527 = vmatmul.msk.bf16.vlgmr.msra.gmra.mxu1 %vm376_vm1, %v2990_v5  ;;  %2531 = vmatmul.msk.bf16.vlgmr.msra.gmra.mxu2 %vm376_vm1, %v2995_v9 }
  0x1b   : > { %766 = vmatpush.bf16.msrb.mxu2 %v757_v14  ;;  %v358_v18 = vpack.c.bf16 %v327_v15, %v326_v12  ;;  %v1204_v22 = vsel %vm425_vm0, %v2653_v21, 0  ;;  %2535 = vmatmul.msk.bf16.vlgmr.msra.gmra.mxu3 %vm376_vm1, %v3002_v13  ;;  %v337_v24 = vld [vmem:[%s2971_s24 + $0x81] sm:$0xff]  ;;  %v338_v35 = vld [vmem:[%s2971_s24 + $0x91] sm:$0xff]  ;;  %v339_v36 = vld [vmem:[%s2971_s24 + $0x99] sm:$0xff] }
  0x1c   : > { %991 = vmatpush.bf16.msrb.mxu3 %v982_v19  ;;  %576 = vmatpush.bf16.msrb.mxu1 %v567_v20  ;;  %v345_v26 = vld [vmem:[%s2971_s24 + $0xe1] sm:$0xff]  ;;  %v3033_v31 = vpack.c.bf16 %v337_v24, %v336_v23  ;;  %v346_v37 = vld [vmem:[%s2971_s24 + $0xf1] sm:$0xff]  ;;  %v347_v38 = vld [vmem:[%s2971_s24 + $0xf9] sm:$0xff]  ;;  %v3054_v43 = vpack.c.bf16 %v339_v36, %v338_v35 }
  0x1d   : > { %2523 = vmatmul.msk.bf16.vlgmr.msra.gmra.mxu0 %vm376_vm1, %v358_v18  ;;  %v353_v28 = vld [vmem:[%s2971_s24 + $0x141] sm:$0xff]  ;;  %v3035_v32 = vpack.c.bf16 %v345_v26, %v344_v25  ;;  %v354_v39 = vld [vmem:[%s2971_s24 + $0x151] sm:$0xff]  ;;  %v355_v40 = vld [vmem:[%s2971_s24 + $0x159] sm:$0xff]  ;;  %v3056_v44 = vpack.c.bf16 %v347_v38, %v346_v37 }
  0x1e   : > { %1213 = vmatpush.bf16.msrb.mxu0 %v1204_v22  ;;  %v329_v30 = vld [vmem:[%s2971_s24 + $0x21] sm:$0xff]  ;;  %v3037_v33 = vpack.c.bf16 %v353_v28, %v352_v27  ;;  %v330_v41 = vld [vmem:[%s2971_s24 + $0x31] sm:$0xff]  ;;  %v331_v42 = vld [vmem:[%s2971_s24 + $0x39] sm:$0xff]  ;;  %v3058_v45 = vpack.c.bf16 %v355_v40, %v354_v39 }
  0x1f   : > { %v359_v34 = vpack.c.bf16 %v329_v30, %v328_v29  ;;  %v3060_v46 = vpack.c.bf16 %v331_v42, %v330_v41  ;;  %v2751_v47 = vld [vmem:[%s3749_s1 + $0x18] sm:$0xf]  ;;  %v2800_v48 = vld [vmem:[%s3749_s1 + $0x1c] sm:$0xf]  ;;  %v2702_v49 = vld [vmem:[%s3749_s1 + $0x14] sm:$0xf] }
  0x20   : > { %v1651_v50 = vsel %vm425_vm0, %v2751_v47, 0  ;;  %v1873_v51 = vsel %vm425_vm0, %v2800_v48, 0  ;;  %v1426_v52 = vsel %vm425_vm0, %v2702_v49, 0  ;;  %v2849_v53 = vld [vmem:[%s3749_s1 + $0x20] sm:$0xf]  ;;  %v340_v55 = vld [vmem:[%s2971_s24 + $0xa9] sm:$0xff] }
  0x21   : > { %1660 = vmatpush.bf16.msra.mxu2 %v1651_v50  ;;  %1882 = vmatpush.bf16.msra.mxu3 %v1873_v51  ;;  %v2095_v54 = vsel %vm425_vm0, %v2849_v53, 0  ;;  %v341_v56 = vld [vmem:[%s2971_s24 + $0xb1] sm:$0xff]  ;;  %v348_v57 = vld [vmem:[%s2971_s24 + $0x109] sm:$0xff]  ;;  %v277_v3 = vld [vmem:[%s2971_s24] sm:$0xff] }
  0x22   : > { %1435 = vmatpush.bf16.msra.mxu1 %v1426_v52  ;;  %2104 = vmatpush.bf16.msra.mxu0 %v2095_v54  ;;  %v349_v58 = vld [vmem:[%s2971_s24 + $0x111] sm:$0xff]  ;;  %v356_v59 = vld [vmem:[%s2971_s24 + $0x169] sm:$0xff]  ;;  %v3094_v63 = vpack.c.bf16 %v341_v56, %v340_v55  ;;  %v2573_v10 = vld [vmem:[%s2971_s24 + $0x20] sm:$0xff] }
  0x23   : > { %v357_v60 = vld [vmem:[%s2971_s24 + $0x171] sm:$0xff]  ;;  %v332_v61 = vld [vmem:[%s2971_s24 + $0x49] sm:$0xff]  ;;  %v3096_v0 = vpack.c.bf16 %v349_v58, %v348_v57  ;;  %v660_v15 = vld [vmem:[%s2971_s24 + $0x1a] sm:$0xff] }
  0x24   : > { %v333_v62 = vld [vmem:[%s2971_s24 + $0x51] sm:$0xff]  ;;  %v3098_v1 = vpack.c.bf16 %v357_v60, %v356_v59  ;;  %v278_v4 = vld [vmem:[%s2971_s24 + $0x8] sm:$0xff]  ;;  %v663_v22 = vld [vmem:[%s2971_s24 + $0x3a] sm:$0xff] }
  0x25   : > { %v3100_v2 = vpack.c.bf16 %v333_v62, %v332_v61  ;;  %v658_v6 = vld [vmem:[%s2971_s24 + $0x2] sm:$0xff]  ;;  %v659_v7 = vld [vmem:[%s2971_s24 + $0xa] sm:$0xff]  ;;  %v2572_v8 = vld [vmem:[%s2971_s24 + $0x18] sm:$0xff]  ;;  %v309_v11 = vpack.c.bf16 %v278_v4, %v277_v3 }
  0x26   : > { %v690_v12 = vpack.c.bf16 %v659_v7, %v658_v6  ;;  %v915_v14 = vpack.c.bf16 %v2573_v10, %v2572_v8  ;;  %v661_v16 = vld [vmem:[%s2971_s24 + $0x22] sm:$0xff]  ;;  %v2574_v17 = vld [vmem:[%s2971_s24 + $0x30] sm:$0xff]  ;;  %v2575_v18 = vld [vmem:[%s2971_s24 + $0x38] sm:$0xff] }
  0x27   : > { %v3124_v19 = vpack.c.bf16 %v661_v16, %v660_v15  ;;  %v3126_v20 = vpack.c.bf16 %v2575_v18, %v2574_v17  ;;  %v662_v21 = vld [vmem:[%s2971_s24 + $0x32] sm:$0xff]  ;;  %v2576_v23 = vld [vmem:[%s2971_s24 + $0x48] sm:$0xff]  ;;  %v2578_v29 = vld [vmem:[%s2971_s24 + $0x60] sm:$0xff] }
  0x28   : > { %v2577_v24 = vld [vmem:[%s2971_s24 + $0x50] sm:$0xff]  ;;  %v3139_v25 = vpack.c.bf16 %v663_v22, %v662_v21  ;;  %v2579_v30 = vld [vmem:[%s2971_s24 + $0x68] sm:$0xff]  ;;  %v2580_v38 = vld [vmem:[%s2971_s24 + $0x78] sm:$0xff] }
  0x29   : > { %v3141_v26 = vpack.c.bf16 %v2577_v24, %v2576_v23  ;;  %v664_v27 = vld [vmem:[%s2971_s24 + $0x4a] sm:$0xff]  ;;  %v665_v28 = vld [vmem:[%s2971_s24 + $0x52] sm:$0xff]  ;;  %v3157_v35 = vpack.c.bf16 %v2579_v30, %v2578_v29  ;;  %v666_v36 = vld [vmem:[%s2971_s24 + $0x62] sm:$0xff] }
  0x2a   : > { %2528 = vmatmul.msk.bf16.gmra.mxu1 %vm376_vm1, %v3033_v31  ;;  %2532 = vmatmul.msk.bf16.gmra.mxu2 %vm376_vm1, %v3035_v32  ;;  %v667_v37 = vld [vmem:[%s2971_s24 + $0x6a] sm:$0xff]  ;;  %v2581_v39 = vld [vmem:[%s2971_s24 + $0x80] sm:$0xff]  ;;  %v2583_v54 = vld [vmem:[%s2971_s24 + $0x98] sm:$0xff] }
  0x2b   : > { %2536 = vmatmul.msk.bf16.gmra.mxu3 %vm376_vm1, %v3037_v33  ;;  %v3171_v40 = vpack.c.bf16 %v667_v37, %v666_v36  ;;  %v3175_v42 = vpack.c.bf16 %v2581_v39, %v2580_v38  ;;  %v668_v51 = vld [vmem:[%s2971_s24 + $0x7a] sm:$0xff]  ;;  %v669_v52 = vld [vmem:[%s2971_s24 + $0x82] sm:$0xff]  ;;  %v2582_v53 = vld [vmem:[%s2971_s24 + $0x90] sm:$0xff] }
  0x2c   : > { %v3207_v58 = vpack.c.bf16 %v2583_v54, %v2582_v53  ;;  %v670_v4 = vld [vmem:[%s2971_s24 + $0x92] sm:$0xff]  ;;  %v671_v6 = vld [vmem:[%s2971_s24 + $0x9a] sm:$0xff]  ;;  %v2584_v7 = vld [vmem:[%s2971_s24 + $0xa8] sm:$0xff] }
  0x2d   : > { %2524 = vmatmul.msk.bf16.gmra.mxu0 %vm376_vm1, %v359_v34  ;;  %v2585_v8 = vld [vmem:[%s2971_s24 + $0xb0] sm:$0xff]  ;;  %v2586_v24 = vld [vmem:[%s2971_s24 + $0xc0] sm:$0xff] }
  0x2e   : > { %v672_v22 = vld [vmem:[%s2971_s24 + $0xaa] sm:$0xff]  ;;  %v673_v23 = vld [vmem:[%s2971_s24 + $0xb2] sm:$0xff]  ;;  %v674_v53 = vld [vmem:[%s2971_s24 + $0xc2] sm:$0xff] }
  0x2f   : > { %v675_v54 = vld [vmem:[%s2971_s24 + $0xca] sm:$0xff] }
  0x3a   : > { %2529 = vmatmul.msk.bf16.gmra.mxu1 %vm376_vm1, %v3054_v43  ;;  %2533 = vmatmul.msk.bf16.gmra.mxu2 %vm376_vm1, %v3056_v44 }
  0x3b   : > { %2537 = vmatmul.msk.bf16.gmra.mxu3 %vm376_vm1, %v3058_v45 }
  0x3d   : > { %2525 = vmatmul.msk.bf16.gmra.mxu0 %vm376_vm1, %v3060_v46 }
  0x4a   : > { %2530 = vmatmul.msk.bf16.gmra.mxu1 %vm376_vm1, %v3094_v63  ;;  %2534 = vmatmul.msk.bf16.gmra.mxu2 %vm376_vm1, %v3096_v0 }
  0x4b   : > { %2538 = vmatmul.msk.bf16.gmra.mxu3 %vm376_vm1, %v3098_v1 }
  0x4d   : > { %2526 = vmatmul.msk.bf16.gmra.mxu0 %vm376_vm1, %v3100_v2 }
  0x5a   : > { %2539 = vmatmul.msk.bf16.vlgmr.msrb.gmra.mxu1 %vm376_vm1, %v309_v11  ;;  %2556 = vmatmul.msk.bf16.vlgmr.msrb.gmra.mxu2 %vm376_vm1, %v690_v12 }
  0x5b   : > { %2605 = vmatmul.msk.bf16.vlgmr.msrb.gmra.mxu3 %vm376_vm1, %v915_v14 }
  0x5d   : > { %2654 = vmatmul.msk.bf16.vlgmr.msrb.gmra.mxu0 %vm376_vm1, %v359_v34  ;;  %v3155_v34 = vpack.c.bf16 %v665_v28, %v664_v27  ;;  %v2587_v27 = vld [vmem:[%s2971_s24 + $0xc8] sm:$0xff] }
  0x5e   : > { %v3271_v36 = vpack.c.bf16 %v2587_v27, %v2586_v24 }
  0x60   : > { %3766 = vst [vmem:[#allocation9_spill] sm:$0xff] %v3271_v36 }
  0x6a   : > { %2540 = vmatmul.msk.bf16.gmra.mxu1 %vm376_vm1, %v915_v14  ;;  %2557 = vmatmul.msk.bf16.gmra.mxu2 %vm376_vm1, %v3124_v19  ;;  %v3239_v14 = vpack.c.bf16 %v2585_v8, %v2584_v7 }
  0x6b   : > { %2606 = vmatmul.msk.bf16.gmra.mxu3 %vm376_vm1, %v3126_v20 }
  0x6c   : > { %3762 = vst [vmem:[#allocation5_spill] sm:$0xff] %v3239_v14 }
  0x6d   : > { %2655 = vmatmul.msk.bf16.gmra.mxu0 %vm376_vm1, %v3060_v46 }
  0x7a   : > { %2541 = vmatmul.msk.bf16.gmra.mxu1 %vm376_vm1, %v3126_v20  ;;  %2558 = vmatmul.msk.bf16.gmra.mxu2 %vm376_vm1, %v3139_v25 }
  0x7b   : > { %2607 = vmatmul.msk.bf16.gmra.mxu3 %vm376_vm1, %v3141_v26 }
  0x7d   : > { %2656 = vmatmul.msk.bf16.gmra.mxu0 %vm376_vm1, %v3100_v2 }
  0x8a   : > { %2542 = vmatmul.msk.bf16.gmra.mxu1 %vm376_vm1, %v3141_v26  ;;  %2559 = vmatmul.msk.bf16.gmra.mxu2 %vm376_vm1, %v3155_v34 }
  0x8b   : > { %2608 = vmatmul.msk.bf16.gmra.mxu3 %vm376_vm1, %v3157_v35 }
  0x8d   : > { %2657 = vmatmul.msk.bf16.gmra.mxu0 %vm376_vm1, %v2990_v5 }
  0x97   : > { %v3173_v41 = vpop.f32.mrf.mxu1 }
  0x9a   : > { %v3177_v47 = vpop.f32.mrf.mxu0  ;;  %2543 = vmatmul.msk.bf16.gmra.mxu1 %vm376_vm1, %v3157_v35  ;;  %2560 = vmatmul.msk.bf16.gmra.mxu2 %vm376_vm1, %v3171_v40 }
  0x9b   : > { %2609 = vmatmul.msk.bf16.gmra.mxu3 %vm376_vm1, %v3175_v42 }
  0x9d   : > { %2658 = vmatmul.msk.bf16.gmra.mxu0 %vm376_vm1, %v3033_v31  ;;  %v3187_v5 = vpop.f32.mrf.mxu2  ;;  %v3203_v31 = vpack.c.bf16 %v669_v52, %v668_v51 }
  0x9e   : > { %v3189_v48 = vpop.f32.mrf.mxu3 }
  0x9f   : > { %v3191_v49 = vpop.f32.mrf.mxu1 }
  0xa2   : > { %v3193_v50 = vpop.f32.mrf.mxu0 }
  0xa5   : > { %v3199_v55 = vpop.f32.mrf.mxu2 }
  0xa6   : > { %v3201_v56 = vpop.f32.mrf.mxu3 }
  0xa7   : > { %3759 = vst [vmem:[#allocation2_spill] sm:$0xff] %v3201_v56  ;;  %v3205_v57 = vpop.f32.mrf.mxu1 }
  0xaa   : > { %v3209_v59 = vpop.f32.mrf.mxu0  ;;  %2544 = vmatmul.msk.bf16.gmra.mxu1 %vm376_vm1, %v3175_v42  ;;  %2561 = vmatmul.msk.bf16.gmra.mxu2 %vm376_vm1, %v3203_v31 }
  0xab   : > { %2610 = vmatmul.msk.bf16.gmra.mxu3 %vm376_vm1, %v3207_v58 }
  0xad   : > { %2659 = vmatmul.msk.bf16.gmra.mxu0 %vm376_vm1, %v3054_v43  ;;  %v3219_v60 = vpop.f32.mrf.mxu2  ;;  %v3235_v43 = vpack.c.bf16 %v671_v6, %v670_v4  ;;  %v2588_v4 = vld [vmem:[%s2971_s24 + $0xd8] sm:$0xff]  ;;  %v2589_v6 = vld [vmem:[%s2971_s24 + $0xe0] sm:$0xff] }
  0xae   : > { %v3221_v61 = vpop.f32.mrf.mxu3 }
  0xaf   : > { %3760 = vst [vmem:[#allocation3_spill] sm:$0xff] %v3221_v61  ;;  %v3223_v62 = vpop.f32.mrf.mxu1 }
  0xb2   : > { %v3225_v3 = vpop.f32.mrf.mxu0 }
  0xb5   : > { %v3231_v10 = vpop.f32.mrf.mxu2 }
  0xb6   : > { %v3233_v11 = vpop.f32.mrf.mxu3 }
  0xb7   : > { %3761 = vst [vmem:[#allocation4_spill] sm:$0xff] %v3233_v11  ;;  %v3237_v12 = vpop.f32.mrf.mxu1 }
  0xba   : > { %v3241_v15 = vpop.f32.mrf.mxu0  ;;  %2545 = vmatmul.msk.bf16.gmra.mxu1 %vm376_vm1, %v3207_v58  ;;  %2562 = vmatmul.msk.bf16.gmra.mxu2 %vm376_vm1, %v3235_v43 }
  0xbb   : > { %2611 = vmatmul.msk.bf16.gmra.mxu3 %vm376_vm1, %v3239_v14 }
  0xbd   : > { %2660 = vmatmul.msk.bf16.gmra.mxu0 %vm376_vm1, %v3094_v63  ;;  %v3251_v16 = vpop.f32.mrf.mxu2  ;;  %v3267_v63 = vpack.c.bf16 %v673_v23, %v672_v22  ;;  %v3299_v22 = vpack.c.bf16 %v675_v54, %v674_v53 }
  0xbe   : > { %v3253_v17 = vpop.f32.mrf.mxu3 }
  0xbf   : > { %3763 = vst [vmem:[#allocation6_spill] sm:$0xff] %v3253_v17  ;;  %v3255_v18 = vpop.f32.mrf.mxu1  ;;  %v677_v17 = vld [vmem:[%s2971_s24 + $0xe2] sm:$0xff] }
  0xc0   : > { %3765 = vst [vmem:[#allocation8_spill] sm:$0xff] %v3267_v63 }
  0xc1   : > { %3769 = vst [vmem:[#allocation12_spill] sm:$0xff] %v3299_v22 }
  0xc2   : > { %v3257_v21 = vpop.f32.mrf.mxu0 }
  0xc5   : > { %v3263_v28 = vpop.f32.mrf.mxu2 }
  0xc6   : > { %v3265_v29 = vpop.f32.mrf.mxu3 }
  0xc7   : > { %3764 = vst [vmem:[#allocation7_spill] sm:$0xff] %v3265_v29  ;;  %v3269_v30 = vpop.f32.mrf.mxu1  ;;  %v676_v29 = vld [vmem:[%s2971_s24 + $0xda] sm:$0xff] }
  0xca   : > { %v3273_v37 = vpop.f32.mrf.mxu0  ;;  %2546 = vmatmul.msk.bf16.gmra.mxu1 %vm376_vm1, %v3239_v14  ;;  %2563 = vmatmul.msk.bf16.gmra.mxu2 %vm376_vm1, %v3267_v63  ;;  %v3319_v14 = vpack.c.bf16 %v677_v17, %v676_v29 }
  0xcb   : > { %2612 = vmatmul.msk.bf16.gmra.mxu3 %vm376_vm1, %v3271_v36 }
  0xcd   : > { %2661 = vmatmul.msk.bf16.gmra.mxu0 %vm376_vm1, %v2995_v9  ;;  %v3283_v38 = vpop.f32.mrf.mxu2  ;;  %v3301_v9 = vpack.c.bf16 %v2589_v6, %v2588_v4 }
  0xce   : > { %v3285_v39 = vpop.f32.mrf.mxu3 }
  0xcf   : > { %3767 = vst [vmem:[#allocation10_spill] sm:$0xff] %v3285_v39  ;;  %v3287_v51 = vpop.f32.mrf.mxu1 }
  0xd2   : > { %v3289_v52 = vpop.f32.mrf.mxu0 }
  0xd5   : > { %v3295_v7 = vpop.f32.mrf.mxu2 }
  0xd6   : > { %v3297_v8 = vpop.f32.mrf.mxu3 }
  0xd7   : > { %3768 = vst [vmem:[#allocation11_spill] sm:$0xff] %v3297_v8  ;;  %v578_v23 = vpop.f32.mrf.mxu1 }
  0xd8   : > { %v579_v24 = vadd.f32 %v578_v23, %v3177_v47 }
  0xda   : > { %v1215_v27 = vpop.f32.mrf.mxu0  ;;  %2547 = vmatmul.msk.bf16.gmra.mxu1 %vm376_vm1, %v3271_v36  ;;  %2564 = vmatmul.msk.bf16.gmra.mxu2 %vm376_vm1, %v3299_v22  ;;  %v2590_v36 = vld [vmem:[%s2971_s24 + $0xf0] sm:$0xff]  ;;  %v2591_v22 = vld [vmem:[%s2971_s24 + $0xf8] sm:$0xff] }
  0xdb   : > { %2613 = vmatmul.msk.bf16.gmra.mxu3 %vm376_vm1, %v3301_v9  ;;  %v3321_v56 = vpack.c.bf16 %v2591_v22, %v2590_v36 }
  0xdd   : > { %2662 = vmatmul.msk.bf16.gmra.mxu0 %vm376_vm1, %v3035_v32  ;;  %v768_v53 = vpop.f32.mrf.mxu2 }
  0xde   : > { %v848_v54 = vadd.f32 %v768_v53, %v579_v24  ;;  %v993_v4 = vpop.f32.mrf.mxu3 }
  0xdf   : > { %v580_v6 = vpop.f32.mrf.mxu1 }
  0xe0   : > { %v1073_v47 = vadd.f32 %v993_v4, %v848_v54  ;;  %v581_v23 = vadd.f32 %v580_v6, %v3193_v50  ;;  %v678_v54 = vld [vmem:[%s2971_s24 + $0xf2] sm:$0xff]  ;;  %v679_v4 = vld [vmem:[%s2971_s24 + $0xfa] sm:$0xff] }
  0xe1   : > { %v2593_v6 = vld [vmem:[%s2971_s24 + $0x110] sm:$0xff] }
  0xe2   : > { %v1217_v8 = vpop.f32.mrf.mxu0  ;;  %v3313_v39 = vadd.f32 %v1215_v27, %v1073_v47 }
  0xe5   : > { %v770_v11 = vpop.f32.mrf.mxu2 }
  0xe6   : > { %v849_v61 = vadd.f32 %v770_v11, %v581_v23  ;;  %v995_v63 = vpop.f32.mrf.mxu3 }
  0xe7   : > { %v583_v32 = vpop.f32.mrf.mxu1 }
  0xe8   : > { %v1074_v24 = vadd.f32 %v995_v63, %v849_v61  ;;  %v584_v53 = vadd.f32 %v583_v32, %v3209_v59 }
  0xea   : > { %v1220_v50 = vpop.f32.mrf.mxu0  ;;  %2548 = vmatmul.msk.bf16.gmra.mxu1 %vm376_vm1, %v3301_v9  ;;  %2565 = vmatmul.msk.bf16.gmra.mxu2 %vm376_vm1, %v3319_v14  ;;  %v3328_v11 = vadd.f32 %v1217_v8, %v1074_v24  ;;  %v2592_v8 = vld [vmem:[%s2971_s24 + $0x108] sm:$0xff]  ;;  %v3341_v24 = vpack.c.bf16 %v679_v4, %v678_v54 }
  0xeb   : > { %2614 = vmatmul.msk.bf16.gmra.mxu3 %vm376_vm1, %v3321_v56 }
  0xec   : > { %3770 = vst [vmem:[#allocation13_spill] sm:$0xff] %v3328_v11  ;;  %v3343_v11 = vpack.c.bf16 %v2593_v6, %v2592_v8  ;;  %v680_v8 = vld [vmem:[%s2971_s24 + $0x10a] sm:$0xff]  ;;  %v681_v6 = vld [vmem:[%s2971_s24 + $0x112] sm:$0xff] }
  0xed   : > { %2663 = vmatmul.msk.bf16.gmra.mxu0 %vm376_vm1, %v3056_v44  ;;  %v773_v61 = vpop.f32.mrf.mxu2 }
  0xee   : > { %v850_v59 = vadd.f32 %v773_v61, %v584_v53  ;;  %v998_v17 = vpop.f32.mrf.mxu3 }
  0xef   : > { %v585_v29 = vpop.f32.mrf.mxu1 }
  0xf0   : > { %v1075_v63 = vadd.f32 %v998_v17, %v850_v59  ;;  %v586_v36 = vadd.f32 %v585_v29, %v3225_v3 }
  0xf2   : > { %v1222_v22 = vpop.f32.mrf.mxu0  ;;  %v3335_v27 = vadd.f32 %v1220_v50, %v1075_v63 }
  0xf5   : > { %v775_v47 = vpop.f32.mrf.mxu2 }
  0xf6   : > { %v851_v23 = vadd.f32 %v775_v47, %v586_v36  ;;  %v1000_v32 = vpop.f32.mrf.mxu3  ;;  %v2595_v47 = vld [vmem:[%s2971_s24 + $0x128] sm:$0xff] }
  0xf7   : > { %v588_v44 = vpop.f32.mrf.mxu1 }
  0xf8   : > { %v1076_v53 = vadd.f32 %v1000_v32, %v851_v23  ;;  %v589_v61 = vadd.f32 %v588_v44, %v3241_v15 }
  0xfa   : > { %v1225_v3 = vpop.f32.mrf.mxu0  ;;  %2549 = vmatmul.msk.bf16.gmra.mxu1 %vm376_vm1, %v3321_v56  ;;  %2566 = vmatmul.msk.bf16.gmra.mxu2 %vm376_vm1, %v3341_v24  ;;  %v3350_v50 = vadd.f32 %v1222_v22, %v1076_v53  ;;  %v2594_v22 = vld [vmem:[%s2971_s24 + $0x120] sm:$0xff]  ;;  %v3363_v53 = vpack.c.bf16 %v681_v6, %v680_v8 }
  0xfb   : > { %2615 = vmatmul.msk.bf16.gmra.mxu3 %vm376_vm1, %v3343_v11 }
  0xfc   : > { %3771 = vst [vmem:[#allocation14_spill] sm:$0xff] %v3350_v50  ;;  %v3365_v50 = vpack.c.bf16 %v2595_v47, %v2594_v22  ;;  %v682_v22 = vld [vmem:[%s2971_s24 + $0x122] sm:$0xff]  ;;  %v683_v47 = vld [vmem:[%s2971_s24 + $0x12a] sm:$0xff] }
  0xfd   : > { %2664 = vmatmul.msk.bf16.gmra.mxu0 %vm376_vm1, %v3096_v0  ;;  %v778_v59 = vpop.f32.mrf.mxu2 }
  0xfe   : > { %v852_v15 = vadd.f32 %v778_v59, %v589_v61  ;;  %v1003_v17 = vpop.f32.mrf.mxu3 }
  0xff   : > { %v590_v29 = vpop.f32.mrf.mxu1 }
 0x100   : > { %v1077_v63 = vadd.f32 %v1003_v17, %v852_v15  ;;  %v591_v36 = vadd.f32 %v590_v29, %v3257_v21 }
 0x102   : > { %v1227_v54 = vpop.f32.mrf.mxu0  ;;  %v3357_v4 = vadd.f32 %v1225_v3, %v1077_v63 }
 0x105   : > { %v780_v23 = vpop.f32.mrf.mxu2 }
 0x106   : > { %v853_v32 = vadd.f32 %v780_v23, %v591_v36  ;;  %v1005_v44 = vpop.f32.mrf.mxu3  ;;  %v2597_v23 = vld [vmem:[%s2971_s24 + $0x140] sm:$0xff] }
 0x107   : > { %v593_v0 = vpop.f32.mrf.mxu1 }
 0x108   : > { %v1078_v61 = vadd.f32 %v1005_v44, %v853_v32  ;;  %v594_v59 = vadd.f32 %v593_v0, %v3273_v37 }
 0x10a   : > { %v1230_v21 = vpop.f32.mrf.mxu0  ;;  %2550 = vmatmul.msk.bf16.gmra.mxu1 %vm376_vm1, %v3343_v11  ;;  %2567 = vmatmul.msk.bf16.gmra.mxu2 %vm376_vm1, %v3363_v53  ;;  %v3372_v3 = vadd.f32 %v1227_v54, %v1078_v61  ;;  %v2596_v54 = vld [vmem:[%s2971_s24 + $0x138] sm:$0xff]  ;;  %v3385_v61 = vpack.c.bf16 %v683_v47, %v682_v22 }
 0x10b   : > { %2616 = vmatmul.msk.bf16.gmra.mxu3 %vm376_vm1, %v3365_v50 }
 0x10c   : > { %3772 = vst [vmem:[#allocation15_spill] sm:$0xff] %v3372_v3  ;;  %v3387_v3 = vpack.c.bf16 %v2597_v23, %v2596_v54  ;;  %v684_v54 = vld [vmem:[%s2971_s24 + $0x13a] sm:$0xff]  ;;  %v685_v23 = vld [vmem:[%s2971_s24 + $0x142] sm:$0xff] }
 0x10d   : > { %2665 = vmatmul.msk.bf16.gmra.mxu0 %vm376_vm1, %v3002_v13  ;;  %v783_v15 = vpop.f32.mrf.mxu2 }
 0x10e   : > { %v854_v37 = vadd.f32 %v783_v15, %v594_v59  ;;  %v1008_v17 = vpop.f32.mrf.mxu3 }
 0x10f   : > { %v595_v29 = vpop.f32.mrf.mxu1 }
 0x110   : > { %v1079_v63 = vadd.f32 %v1008_v17, %v854_v37  ;;  %v596_v36 = vadd.f32 %v595_v29, %v3289_v52 }
 0x112   : > { %v1232_v8 = vpop.f32.mrf.mxu0  ;;  %v3379_v6 = vadd.f32 %v1230_v21, %v1079_v63 }
 0x115   : > { %v785_v32 = vpop.f32.mrf.mxu2 }
 0x116   : > { %v855_v44 = vadd.f32 %v785_v32, %v596_v36  ;;  %v1010_v0 = vpop.f32.mrf.mxu3  ;;  %v2598_v32 = vld [vmem:[%s2971_s24 + $0x150] sm:$0xff] }
 0x117   : > { %v598_v13 = vpop.f32.mrf.mxu1 }
 0x118   : > { %v1080_v59 = vadd.f32 %v1010_v0, %v855_v44  ;;  %v599_v21 = vadd.f32 %v598_v13, %v3173_v41  ;;  %v2599_v44 = vld [vmem:[%s2971_s24 + $0x158] sm:$0xff] }
 0x119   : > { %v3409_v13 = vpack.c.bf16 %v2599_v44, %v2598_v32  ;;  %v687_v32 = vld [vmem:[%s2971_s24 + $0x15a] sm:$0xff]  ;;  %v2600_v44 = vld [vmem:[%s2971_s24 + $0x168] sm:$0xff] }
 0x11a   : > { %v1235_v15 = vpop.f32.mrf.mxu0  ;;  %2551 = vmatmul.msk.bf16.gmra.mxu1 %vm376_vm1, %v3365_v50  ;;  %2568 = vmatmul.msk.bf16.gmra.mxu2 %vm376_vm1, %v3385_v61  ;;  %v3393_v52 = vadd.f32 %v1232_v8, %v1080_v59 }
 0x11b   : > { %2617 = vmatmul.msk.bf16.gmra.mxu3 %vm376_vm1, %v3387_v3 }
 0x11c   : > { %3773 = vst [vmem:[#allocation16_spill] sm:$0xff] %v3393_v52 }
 0x11d   : > { %2666 = vmatmul.msk.bf16.gmra.mxu0 %vm376_vm1, %v3037_v33  ;;  %v788_v37 = vpop.f32.mrf.mxu2  ;;  %v3407_v33 = vpack.c.bf16 %v685_v23, %v684_v54 }
 0x11e   : > { %v856_v17 = vadd.f32 %v788_v37, %v599_v21  ;;  %v1013_v29 = vpop.f32.mrf.mxu3 }
 0x11f   : > { %v600_v63 = vpop.f32.mrf.mxu1 }
 0x120   : > { %v1081_v36 = vadd.f32 %v1013_v29, %v856_v17  ;;  %v601_v8 = vadd.f32 %v600_v63, %v3191_v49 }
 0x122   : > { %v1237_v22 = vpop.f32.mrf.mxu0  ;;  %v3400_v47 = vadd.f32 %v1235_v15, %v1081_v36 }
 0x125   : > { %v790_v0 = vpop.f32.mrf.mxu2 }
 0x126   : > { %v857_v59 = vadd.f32 %v790_v0, %v601_v8  ;;  %v1015_v52 = vpop.f32.mrf.mxu3  ;;  %v686_v8 = vld [vmem:[%s2971_s24 + $0x152] sm:$0xff] }
 0x127   : > { %v603_v41 = vpop.f32.mrf.mxu1  ;;  %v2601_v0 = vld [vmem:[%s2971_s24 + $0x170] sm:$0xff] }
 0x128   : > { %v1082_v21 = vadd.f32 %v1015_v52, %v857_v59  ;;  %v604_v15 = vadd.f32 %v603_v41, %v3205_v57  ;;  %v3431_v41 = vpack.c.bf16 %v2601_v0, %v2600_v44  ;;  %v2602_v44 = vld [vmem:[%s2971_s24 + $0x180] sm:$0xff] }
 0x12a   : > { %v1240_v37 = vpop.f32.mrf.mxu0  ;;  %2552 = vmatmul.msk.bf16.gmra.mxu1 %vm376_vm1, %v3387_v3  ;;  %2569 = vmatmul.msk.bf16.gmra.mxu2 %vm376_vm1, %v3407_v33  ;;  %v3415_v49 = vadd.f32 %v1237_v22, %v1082_v21 }
 0x12b   : > { %2618 = vmatmul.msk.bf16.gmra.mxu3 %vm376_vm1, %v3409_v13 }
 0x12c   : > { %3774 = vst [vmem:[#allocation17_spill] sm:$0xff] %v3415_v49 }
 0x12d   : > { %2667 = vmatmul.msk.bf16.gmra.mxu0 %vm376_vm1, %v3058_v45  ;;  %v793_v52 = vpop.f32.mrf.mxu2  ;;  %v3429_v45 = vpack.c.bf16 %v687_v32, %v686_v8 }
 0x12e   : > { %v858_v17 = vadd.f32 %v793_v52, %v604_v15  ;;  %v1018_v29 = vpop.f32.mrf.mxu3 }
 0x12f   : > { %v605_v63 = vpop.f32.mrf.mxu1 }
 0x130   : > { %v1083_v36 = vadd.f32 %v1018_v29, %v858_v17  ;;  %v606_v22 = vadd.f32 %v605_v63, %v3223_v62 }
 0x132   : > { %v1242_v54 = vpop.f32.mrf.mxu0  ;;  %v3422_v23 = vadd.f32 %v1240_v37, %v1083_v36 }
 0x134   : > { %3775 = vst [vmem:[#allocation18_spill] sm:$0xff] %v3422_v23 }
 0x135   : > { %v795_v59 = vpop.f32.mrf.mxu2 }
 0x136   : > { %v859_v21 = vadd.f32 %v795_v59, %v606_v22  ;;  %v1020_v49 = vpop.f32.mrf.mxu3  ;;  %v689_v22 = vld [vmem:[%s2971_s24 + $0x172] sm:$0xff]  ;;  %v2603_v59 = vld [vmem:[%s2971_s24 + $0x188] sm:$0xff] }
 0x137   : > { %v608_v57 = vpop.f32.mrf.mxu1 }
 0x138   : > { %v1084_v15 = vadd.f32 %v1020_v49, %v859_v21  ;;  %v609_v37 = vadd.f32 %v608_v57, %v3237_v12  ;;  %v2651_v21 = vld [vmem:[%s2971_s24 + $0x181] sm:$0xff] }
 0x13a   : > { %v1245_v52 = vpop.f32.mrf.mxu0  ;;  %2553 = vmatmul.msk.bf16.gmra.mxu1 %vm376_vm1, %v3409_v13  ;;  %2570 = vmatmul.msk.bf16.gmra.mxu2 %vm376_vm1, %v3429_v45  ;;  %v3437_v62 = vadd.f32 %v1242_v54, %v1084_v15  ;;  %v688_v54 = vld [vmem:[%s2971_s24 + $0x16a] sm:$0xff] }
 0x13b   : > { %2619 = vmatmul.msk.bf16.gmra.mxu3 %vm376_vm1, %v3431_v41  ;;  %v2652_v15 = vld [vmem:[%s2971_s24 + $0x189] sm:$0xff]  ;;  %v3453_v12 = vpack.c.bf16 %v689_v22, %v688_v54 }
 0x13c   : > { %3776 = vst [vmem:[#allocation19_spill] sm:$0xff] %v3437_v62 }
 0x13d   : > { %2668 = vmatmul.msk.bf16.gmra.mxu0 %vm376_vm1, %v3098_v1  ;;  %v798_v49 = vpop.f32.mrf.mxu2 }
 0x13e   : > { %v860_v17 = vadd.f32 %v798_v49, %v609_v37  ;;  %v1023_v29 = vpop.f32.mrf.mxu3  ;;  %v930_v37 = vpack.c.bf16 %v2603_v59, %v2602_v44  ;;  %v1152_v49 = vpack.c.bf16 %v2652_v15, %v2651_v21 }
 0x13f   : > { %v610_v63 = vpop.f32.mrf.mxu1 }
 0x140   : > { %v1085_v36 = vadd.f32 %v1023_v29, %v860_v17  ;;  %v611_v0 = vadd.f32 %v610_v63, %v3255_v18 }
 0x142   : > { %v1247_v8 = vpop.f32.mrf.mxu0  ;;  %v3444_v32 = vadd.f32 %v1245_v52, %v1085_v36 }
 0x145   : > { %v800_v62 = vpop.f32.mrf.mxu2 }
 0x146   : > { %v861_v1 = vadd.f32 %v800_v62, %v611_v0  ;;  %v1025_v23 = vpop.f32.mrf.mxu3 }
 0x147   : > { %v613_v57 = vpop.f32.mrf.mxu1 }
 0x148   : > { %v1086_v17 = vadd.f32 %v1025_v23, %v861_v1  ;;  %v614_v52 = vadd.f32 %v613_v57, %v3269_v30 }
 0x14a   : > { %v1250_v29 = vpop.f32.mrf.mxu0  ;;  %2554 = vmatmul.msk.bf16.gmra.mxu1 %vm376_vm1, %v3431_v41  ;;  %2571 = vmatmul.msk.bf16.gmra.mxu2 %vm376_vm1, %v3453_v12  ;;  %v3459_v18 = vadd.f32 %v1247_v8, %v1086_v17 }
 0x14b   : > { %2620 = vmatmul.msk.bf16.gmra.mxu3 %vm376_vm1, %v930_v37 }
 0x14d   : > { %2669 = vmatmul.msk.bf16.gmra.mxu0 %vm376_vm1, %v1152_v49  ;;  %v803_v62 = vpop.f32.mrf.mxu2 }
 0x14e   : > { %v862_v63 = vadd.f32 %v803_v62, %v614_v52  ;;  %v1028_v36 = vpop.f32.mrf.mxu3 }
 0x14f   : > { %v615_v54 = vpop.f32.mrf.mxu1 }
 0x150   : > { %v1087_v23 = vadd.f32 %v1028_v36, %v862_v63  ;;  %v616_v0 = vadd.f32 %v615_v54, %v3287_v51 }
 0x152   : > { %v1252_v22 = vpop.f32.mrf.mxu0  ;;  %v3464_v44 = vadd.f32 %v1250_v29, %v1087_v23 }
 0x155   : > { %v805_v59 = vpop.f32.mrf.mxu2 }
 0x156   : > { %v863_v21 = vadd.f32 %v805_v59, %v616_v0  ;;  %v1030_v8 = vpop.f32.mrf.mxu3 }
 0x157   : > { %v618_v15 = vpop.f32.mrf.mxu1 }
 0x158   : > { %v1088_v1 = vadd.f32 %v1030_v8, %v863_v21  ;;  %v619_v51 = vadd.f32 %v618_v15, %v3187_v5 }
 0x15a   : > { %v1255_v37 = vpop.f32.mrf.mxu0  ;;  %2703 = vmatmul.msk.bf16.vlgmr.msra.gmra.mxu1 %vm376_vm1, %v3124_v19  ;;  %2752 = vmatmul.msk.bf16.vlgmr.msra.gmra.mxu2 %vm376_vm1, %v3126_v20  ;;  %v3471_v30 = vadd.f32 %v1252_v22, %v1088_v1 }
 0x15b   : > { %2801 = vmatmul.msk.bf16.vlgmr.msra.gmra.mxu3 %vm376_vm1, %v3060_v46 }
 0x15d   : > { %2850 = vmatmul.msk.bf16.vlgmr.msra.gmra.mxu0 %vm376_vm1, %v3139_v25  ;;  %v808_v57 = vpop.f32.mrf.mxu2 }
 0x15e   : > { %v864_v49 = vadd.f32 %v808_v57, %v619_v51  ;;  %v1033_v17 = vpop.f32.mrf.mxu3  ;;  %v2773_v51 = vld [vmem:[%s2971_s24 + $0x69] sm:$0xff] }
 0x15f   : > { %v620_v29 = vpop.f32.mrf.mxu1 }
 0x160   : > { %v1089_v52 = vadd.f32 %v1033_v17, %v864_v49  ;;  %v621_v20 = vadd.f32 %v620_v29, %v3199_v55 }
 0x162   : > { %v1257_v62 = vpop.f32.mrf.mxu0  ;;  %v3478_v19 = vadd.f32 %v1255_v37, %v1089_v52  ;;  %v2772_v37 = vld [vmem:[%s2971_s24 + $0x61] sm:$0xff] }
 0x163   : > { %v1808_v29 = vpack.c.bf16 %v2773_v51, %v2772_v37 }
 0x165   : > { %v810_v63 = vpop.f32.mrf.mxu2 }
 0x166   : > { %v865_v36 = vadd.f32 %v810_v63, %v621_v20  ;;  %v1035_v54 = vpop.f32.mrf.mxu3 }
 0x167   : > { %v623_v23 = vpop.f32.mrf.mxu1 }
 0x168   : > { %v1090_v46 = vadd.f32 %v1035_v54, %v865_v36  ;;  %v624_v55 = vadd.f32 %v623_v23, %v3219_v60 }
 0x16a   : > { %v1260_v22 = vpop.f32.mrf.mxu0  ;;  %2704 = vmatmul.msk.bf16.gmra.mxu1 %vm376_vm1, %v3139_v25  ;;  %2753 = vmatmul.msk.bf16.gmra.mxu2 %vm376_vm1, %v3141_v26  ;;  %v3485_v5 = vadd.f32 %v1257_v62, %v1090_v46 }
 0x16b   : > { %2802 = vmatmul.msk.bf16.gmra.mxu3 %vm376_vm1, %v3100_v2 }
 0x16d   : > { %2851 = vmatmul.msk.bf16.gmra.mxu0 %vm376_vm1, %v3155_v34  ;;  %v813_v0 = vpop.f32.mrf.mxu2 }
 0x16e   : > { %v866_v59 = vadd.f32 %v813_v0, %v624_v55  ;;  %v1038_v21 = vpop.f32.mrf.mxu3  ;;  %v2775_v55 = vld [vmem:[%s2971_s24 + $0x81] sm:$0xff] }
 0x16f   : > { %v625_v8 = vpop.f32.mrf.mxu1 }
 0x170   : > { %v1091_v15 = vadd.f32 %v1038_v21, %v866_v59  ;;  %v626_v26 = vadd.f32 %v625_v8, %v3231_v10 }
 0x172   : > { %v1262_v1 = vpop.f32.mrf.mxu0  ;;  %v3492_v25 = vadd.f32 %v1260_v22, %v1091_v15 }
 0x175   : > { %v815_v57 = vpop.f32.mrf.mxu2 }
 0x176   : > { %v867_v49 = vadd.f32 %v815_v57, %v626_v26  ;;  %v1040_v2 = vpop.f32.mrf.mxu3 }
 0x177   : > { %v628_v17 = vpop.f32.mrf.mxu1 }
 0x178   : > { %v1092_v52 = vadd.f32 %v1040_v2, %v867_v49  ;;  %v629_v10 = vadd.f32 %v628_v17, %v3251_v16 }
 0x17a   : > { %v1265_v60 = vpop.f32.mrf.mxu0  ;;  %2705 = vmatmul.msk.bf16.gmra.mxu1 %vm376_vm1, %v3155_v34  ;;  %2754 = vmatmul.msk.bf16.gmra.mxu2 %vm376_vm1, %v3157_v35  ;;  %v3501_v62 = vadd.f32 %v1262_v1, %v1092_v52  ;;  %v2774_v35 = vld [vmem:[%s2971_s24 + $0x79] sm:$0xff] }
 0x17b   : > { %2803 = vmatmul.msk.bf16.gmra.mxu3 %vm376_vm1, %v1808_v29  ;;  %v1809_v15 = vpack.c.bf16 %v2775_v55, %v2774_v35  ;;  %v2777_v52 = vld [vmem:[%s2971_s24 + $0x99] sm:$0xff] }
 0x17d   : > { %2852 = vmatmul.msk.bf16.gmra.mxu0 %vm376_vm1, %v3171_v40  ;;  %v818_v20 = vpop.f32.mrf.mxu2 }
 0x17e   : > { %v868_v63 = vadd.f32 %v818_v20, %v629_v10  ;;  %v1043_v36 = vpop.f32.mrf.mxu3 }
 0x17f   : > { %v630_v54 = vpop.f32.mrf.mxu1 }
 0x180   : > { %v1093_v23 = vadd.f32 %v1043_v36, %v868_v63  ;;  %v631_v34 = vadd.f32 %v630_v54, %v3263_v28 }
 0x182   : > { %v1267_v46 = vpop.f32.mrf.mxu0  ;;  %v3507_v22 = vadd.f32 %v1265_v60, %v1093_v23 }
 0x185   : > { %v820_v0 = vpop.f32.mrf.mxu2 }
 0x186   : > { %v869_v59 = vadd.f32 %v820_v0, %v631_v34  ;;  %v1045_v21 = vpop.f32.mrf.mxu3 }
 0x187   : > { %v633_v8 = vpop.f32.mrf.mxu1 }
 0x188   : > { %v1094_v1 = vadd.f32 %v1045_v21, %v869_v59  ;;  %v634_v28 = vadd.f32 %v633_v8, %v3283_v38 }
 0x18a   : > { %v1270_v16 = vpop.f32.mrf.mxu0  ;;  %2706 = vmatmul.msk.bf16.gmra.mxu1 %vm376_vm1, %v3171_v40  ;;  %2755 = vmatmul.msk.bf16.gmra.mxu2 %vm376_vm1, %v3175_v42  ;;  %v3516_v26 = vadd.f32 %v1267_v46, %v1094_v1  ;;  %v2776_v42 = vld [vmem:[%s2971_s24 + $0x91] sm:$0xff] }
 0x18b   : > { %2804 = vmatmul.msk.bf16.gmra.mxu3 %vm376_vm1, %v1809_v15  ;;  %v1810_v36 = vpack.c.bf16 %v2777_v52, %v2776_v42  ;;  %v2779_v15 = vld [vmem:[%s2971_s24 + $0xb1] sm:$0xff] }
 0x18d   : > { %2853 = vmatmul.msk.bf16.gmra.mxu0 %vm376_vm1, %v3203_v31  ;;  %v823_v37 = vpop.f32.mrf.mxu2 }
 0x18e   : > { %v870_v51 = vadd.f32 %v823_v37, %v634_v28  ;;  %v1048_v57 = vpop.f32.mrf.mxu3 }
 0x18f   : > { %v635_v49 = vpop.f32.mrf.mxu1 }
 0x190   : > { %v1095_v2 = vadd.f32 %v1048_v57, %v870_v51  ;;  %v636_v40 = vadd.f32 %v635_v49, %v3295_v7  ;;  %v3778_v49 = vld [vmem:[#allocation5_spill] sm:$0xff] }
 0x192   : > { %v1272_v17 = vpop.f32.mrf.mxu0  ;;  %v3522_v29 = vadd.f32 %v1270_v16, %v1095_v2 }
 0x195   : > { %v825_v60 = vpop.f32.mrf.mxu2 }
 0x196   : > { %v871_v10 = vadd.f32 %v825_v60, %v636_v40  ;;  %v1050_v20 = vpop.f32.mrf.mxu3  ;;  %v3780_v40 = vld [vmem:[#allocation3_spill] sm:$0xff] }
 0x197   : > { %v638_v63 = vpop.f32.mrf.mxu1 }
 0x198   : > { %v1096_v54 = vadd.f32 %v1050_v20, %v871_v10  ;;  %v639_v7 = vadd.f32 %v638_v63, %v3189_v48 }
 0x19a   : > { %v1275_v38 = vpop.f32.mrf.mxu0  ;;  %2707 = vmatmul.msk.bf16.gmra.mxu1 %vm376_vm1, %v3203_v31  ;;  %2756 = vmatmul.msk.bf16.gmra.mxu2 %vm376_vm1, %v3207_v58  ;;  %v3531_v23 = vadd.f32 %v1272_v17, %v1096_v54  ;;  %v3777_v31 = vld [vmem:[#allocation2_spill] sm:$0xff]  ;;  %v2778_v58 = vld [vmem:[%s2971_s24 + $0xa9] sm:$0xff] }
 0x19b   : > { %2805 = vmatmul.msk.bf16.gmra.mxu3 %vm376_vm1, %v1810_v36  ;;  %v1811_v51 = vpack.c.bf16 %v2779_v15, %v2778_v58  ;;  %v3779_v17 = vld [vmem:[#allocation8_spill] sm:$0xff]  ;;  %v3782_v58 = vld [vmem:[#allocation9_spill] sm:$0xff] }
 0x19d   : > { %2854 = vmatmul.msk.bf16.gmra.mxu0 %vm376_vm1, %v3235_v43  ;;  %v828_v46 = vpop.f32.mrf.mxu2 }
 0x19e   : > { %v872_v34 = vadd.f32 %v828_v46, %v639_v7  ;;  %v1053_v35 = vpop.f32.mrf.mxu3  ;;  %v2780_v7 = vld [vmem:[%s2971_s24 + $0xc1] sm:$0xff]  ;;  %v2781_v46 = vld [vmem:[%s2971_s24 + $0xc9] sm:$0xff] }
 0x19f   : > { %v640_v55 = vpop.f32.mrf.mxu1 }
 0x1a0   : > { %v1097_v0 = vadd.f32 %v1053_v35, %v872_v34  ;;  %v641_v8 = vadd.f32 %v640_v55, %v3777_v31 }
 0x1a2   : > { %v1277_v59 = vpop.f32.mrf.mxu0  ;;  %v3537_v21 = vadd.f32 %v1275_v38, %v1097_v0 }
 0x1a5   : > { %v830_v1 = vpop.f32.mrf.mxu2 }
 0x1a6   : > { %v873_v16 = vadd.f32 %v830_v1, %v641_v8  ;;  %v1055_v28 = vpop.f32.mrf.mxu3  ;;  %v3783_v1 = vld [vmem:[#allocation12_spill] sm:$0xff] }
 0x1a7   : > { %v643_v37 = vpop.f32.mrf.mxu1 }
 0x1a8   : > { %v1098_v57 = vadd.f32 %v1055_v28, %v873_v16  ;;  %v644_v42 = vadd.f32 %v643_v37, %v3780_v40  ;;  %v3784_v16 = vld [vmem:[#allocation6_spill] sm:$0xff] }
 0x1aa   : > { %v1280_v48 = vpop.f32.mrf.mxu0  ;;  %2708 = vmatmul.msk.bf16.gmra.mxu1 %vm376_vm1, %v3235_v43  ;;  %2757 = vmatmul.msk.bf16.gmra.mxu2 %vm376_vm1, %v3778_v49  ;;  %v3546_v2 = vadd.f32 %v1277_v59, %v1098_v57  ;;  %v3781_v43 = vld [vmem:[#allocation4_spill] sm:$0xff]  ;;  %v1812_v59 = vpack.c.bf16 %v2781_v46, %v2780_v7 }
 0x1ab   : > { %2806 = vmatmul.msk.bf16.gmra.mxu3 %vm376_vm1, %v1811_v51 }
 0x1ad   : > { %2855 = vmatmul.msk.bf16.gmra.mxu0 %vm376_vm1, %v3779_v17  ;;  %v833_v52 = vpop.f32.mrf.mxu2 }
 0x1ae   : > { %v874_v60 = vadd.f32 %v833_v52, %v644_v42  ;;  %v1058_v10 = vpop.f32.mrf.mxu3 }
 0x1af   : > { %v645_v20 = vpop.f32.mrf.mxu1 }
 0x1b0   : > { %v1099_v63 = vadd.f32 %v1058_v10, %v874_v60  ;;  %v646_v38 = vadd.f32 %v645_v20, %v3781_v43  ;;  %v2782_v60 = vld [vmem:[%s2971_s24 + $0xd9] sm:$0xff]  ;;  %v2783_v10 = vld [vmem:[%s2971_s24 + $0xe1] sm:$0xff] }
 0x1b2   : > { %v1282_v36 = vpop.f32.mrf.mxu0  ;;  %v3552_v54 = vadd.f32 %v1280_v48, %v1099_v63 }
 0x1b5   : > { %v835_v34 = vpop.f32.mrf.mxu2 }
 0x1b6   : > { %v875_v35 = vadd.f32 %v835_v34, %v646_v38  ;;  %v1060_v55 = vpop.f32.mrf.mxu3  ;;  %v1813_v38 = vpack.c.bf16 %v2783_v10, %v2782_v60 }
 0x1b7   : > { %v648_v0 = vpop.f32.mrf.mxu1 }
 0x1b8   : > { %v1100_v31 = vadd.f32 %v1060_v55, %v875_v35  ;;  %v649_v28 = vadd.f32 %v648_v0, %v3784_v16  ;;  %v3786_v35 = vld [vmem:[#allocation10_spill] sm:$0xff] }
 0x1ba   : > { %v1285_v8 = vpop.f32.mrf.mxu0  ;;  %2709 = vmatmul.msk.bf16.gmra.mxu1 %vm376_vm1, %v3779_v17  ;;  %2758 = vmatmul.msk.bf16.gmra.mxu2 %vm376_vm1, %v3782_v58  ;;  %v3561_v15 = vadd.f32 %v1282_v36, %v1100_v31  ;;  %v3785_v17 = vld [vmem:[#allocation7_spill] sm:$0xff] }
 0x1bb   : > { %2807 = vmatmul.msk.bf16.gmra.mxu3 %vm376_vm1, %v1812_v59 }
 0x1bd   : > { %2856 = vmatmul.msk.bf16.gmra.mxu0 %vm376_vm1, %v3783_v1  ;;  %v838_v37 = vpop.f32.mrf.mxu2 }
 0x1be   : > { %v876_v51 = vadd.f32 %v838_v37, %v649_v28  ;;  %v1063_v57 = vpop.f32.mrf.mxu3 }
 0x1bf   : > { %v650_v48 = vpop.f32.mrf.mxu1 }
 0x1c0   : > { %v1101_v49 = vadd.f32 %v1063_v57, %v876_v51  ;;  %v651_v52 = vadd.f32 %v650_v48, %v3785_v17  ;;  %v2785_v51 = vld [vmem:[%s2971_s24 + $0xf9] sm:$0xff] }
 0x1c2   : > { %v1287_v40 = vpop.f32.mrf.mxu0  ;;  %v3567_v42 = vadd.f32 %v1285_v8, %v1101_v49 }
 0x1c5   : > { %v840_v20 = vpop.f32.mrf.mxu2 }
 0x1c6   : > { %v877_v63 = vadd.f32 %v840_v20, %v651_v52  ;;  %v1065_v36 = vpop.f32.mrf.mxu3 }
 0x1c7   : > { %v653_v43 = vpop.f32.mrf.mxu1 }
 0x1c8   : > { %v1102_v7 = vadd.f32 %v1065_v36, %v877_v63  ;;  %v654_v55 = vadd.f32 %v653_v43, %v3786_v35  ;;  %v3788_v35 = vld [vmem:[#allocation13_spill] sm:$0xff] }
 0x1ca   : > { %v1290_v46 = vpop.f32.mrf.mxu0  ;;  %2710 = vmatmul.msk.bf16.gmra.mxu1 %vm376_vm1, %v3783_v1  ;;  %2759 = vmatmul.msk.bf16.gmra.mxu2 %vm376_vm1, %v3301_v9  ;;  %v3576_v34 = vadd.f32 %v1287_v40, %v1102_v7  ;;  %v3787_v1 = vld [vmem:[#allocation11_spill] sm:$0xff]  ;;  %v2784_v9 = vld [vmem:[%s2971_s24 + $0xf1] sm:$0xff] }
 0x1cb   : > { %2808 = vmatmul.msk.bf16.gmra.mxu3 %vm376_vm1, %v1813_v38  ;;  %v1814_v17 = vpack.c.bf16 %v2785_v51, %v2784_v9 }
 0x1cd   : > { %2857 = vmatmul.msk.bf16.gmra.mxu0 %vm376_vm1, %v3319_v14  ;;  %v843_v0 = vpop.f32.mrf.mxu2 }
 0x1ce   : > { %v878_v59 = vadd.f32 %v843_v0, %v654_v55  ;;  %v1068_v31 = vpop.f32.mrf.mxu3  ;;  %v2787_v0 = vld [vmem:[%s2971_s24 + $0x111] sm:$0xff] }
 0x1cf   : > { %v655_v8 = vpop.f32.mrf.mxu1 }
 0x1d0   : > { %v1103_v58 = vadd.f32 %v1068_v31, %v878_v59  ;;  %v656_v37 = vadd.f32 %v655_v8, %v3787_v1 }
 0x1d2   : > { %v1292_v16 = vpop.f32.mrf.mxu0  ;;  %v3582_v28 = vadd.f32 %v1290_v46, %v1103_v58 }
 0x1d5   : > { %v845_v57 = vpop.f32.mrf.mxu2 }
 0x1d6   : > { %v879_v48 = vadd.f32 %v845_v57, %v656_v37  ;;  %v1070_v49 = vpop.f32.mrf.mxu3 }
 0x1d7   : > { %v1437_v40 = vpop.f32.mrf.mxu1 }
 0x1d8   : > { %v1104_v52 = vadd.f32 %v1070_v49, %v879_v48  ;;  %v1517_v20 = vadd.f32 %v1437_v40, %v3313_v39 }
 0x1da   : > { %v2106_v60 = vpop.f32.mrf.mxu0  ;;  %2711 = vmatmul.msk.bf16.gmra.mxu1 %vm376_vm1, %v3319_v14  ;;  %2760 = vmatmul.msk.bf16.gmra.mxu2 %vm376_vm1, %v3321_v56  ;;  %v3591_v10 = vadd.f32 %v1292_v16, %v1104_v52  ;;  %v2786_v56 = vld [vmem:[%s2971_s24 + $0x109] sm:$0xff] }
 0x1db   : > { %2809 = vmatmul.msk.bf16.gmra.mxu3 %vm376_vm1, %v1814_v17  ;;  %v1815_v16 = vpack.c.bf16 %v2787_v0, %v2786_v56 }
 0x1dd   : > { %2858 = vmatmul.msk.bf16.gmra.mxu0 %vm376_vm1, %v3341_v24  ;;  %v1662_v63 = vpop.f32.mrf.mxu2 }
 0x1de   : > { %v1742_v36 = vadd.f32 %v1662_v63, %v1517_v20  ;;  %v1884_v43 = vpop.f32.mrf.mxu3 }
 0x1df   : > { %v1439_v38 = vpop.f32.mrf.mxu1 }
 0x1e0   : > { %v1964_v7 = vadd.f32 %v1884_v43, %v1742_v36  ;;  %v1518_v55 = vadd.f32 %v1439_v38, %v3788_v35  ;;  %v3789_v43 = vld [vmem:[#allocation14_spill] sm:$0xff] }
 0x1e2   : > { %v2108_v46 = vpop.f32.mrf.mxu0  ;;  %v2186_v14 = vadd.f32 %v2106_v60, %v1964_v7  ;;  %v2788_v7 = vld [vmem:[%s2971_s24 + $0x121] sm:$0xff] }
 0x1e4   : > { %2218 = vst [vmem:[%s2976_s27] sm:$0xff] %v2186_v14  ;;  %v2291_v9 = vmul.f32 %v2186_v14, %v2186_v14 }
 0x1e5   : > { %v1664_v59 = vpop.f32.mrf.mxu2 }
 0x1e6   : > { %v1743_v31 = vadd.f32 %v1664_v59, %v1518_v55  ;;  %v1886_v8 = vpop.f32.mrf.mxu3 }
 0x1e7   : > { %v1442_v58 = vpop.f32.mrf.mxu1 }
 0x1e8   : > { %v1965_v1 = vadd.f32 %v1886_v8, %v1743_v31  ;;  %v1519_v48 = vadd.f32 %v1442_v58, %v3335_v27 }
 0x1ea   : > { %v2111_v39 = vpop.f32.mrf.mxu0  ;;  %v2187_v37 = vadd.f32 %v2108_v46, %v1965_v1  ;;  %2712 = vmatmul.msk.bf16.gmra.mxu1 %vm376_vm1, %v3341_v24  ;;  %2761 = vmatmul.msk.bf16.gmra.mxu2 %vm376_vm1, %v3343_v11  ;;  %v2789_v46 = vld [vmem:[%s2971_s24 + $0x129] sm:$0xff] }
 0x1eb   : > { %2810 = vmatmul.msk.bf16.gmra.mxu3 %vm376_vm1, %v1815_v16  ;;  %v1816_v0 = vpack.c.bf16 %v2789_v46, %v2788_v7 }
 0x1ec   : > { %2219 = vst [vmem:[%s2976_s27 + $0x8] sm:$0xff] %v2187_v37  ;;  %v2251_v51 = vadd.f32 %v2187_v37, %v2186_v14  ;;  %v2292_v57 = vmul.f32 %v2187_v37, %v2187_v37 }
 0x1ed   : > { %2859 = vmatmul.msk.bf16.gmra.mxu0 %vm376_vm1, %v3363_v53  ;;  %v1667_v49 = vpop.f32.mrf.mxu2 }
 0x1ee   : > { %v2323_v40 = vadd.f32 %v2292_v57, %v2291_v9  ;;  %v1744_v24 = vadd.f32 %v1667_v49, %v1519_v48  ;;  %v1889_v17 = vpop.f32.mrf.mxu3 }
 0x1ef   : > { %v1444_v52 = vpop.f32.mrf.mxu1 }
 0x1f0   : > { %v1966_v11 = vadd.f32 %v1889_v17, %v1744_v24  ;;  %v1520_v38 = vadd.f32 %v1444_v52, %v3789_v43  ;;  %v3790_v24 = vld [vmem:[#allocation15_spill] sm:$0xff]  ;;  %v2790_v52 = vld [vmem:[%s2971_s24 + $0x139] sm:$0xff] }
 0x1f2   : > { %v2113_v60 = vpop.f32.mrf.mxu0  ;;  %v2188_v20 = vadd.f32 %v2111_v39, %v1966_v11  ;;  %v2791_v11 = vld [vmem:[%s2971_s24 + $0x141] sm:$0xff] }
 0x1f3   : > { %v1817_v43 = vpack.c.bf16 %v2791_v11, %v2790_v52 }
 0x1f4   : > { %2220 = vst [vmem:[%s2976_s27 + $0x10] sm:$0xff] %v2188_v20  ;;  %v2252_v63 = vadd.f32 %v2251_v51, %v2188_v20  ;;  %v2293_v36 = vmul.f32 %v2188_v20, %v2188_v20 }
 0x1f5   : > { %v1669_v14 = vpop.f32.mrf.mxu2 }
 0x1f6   : > { %v2324_v35 = vadd.f32 %v2323_v40, %v2293_v36  ;;  %v1745_v55 = vadd.f32 %v1669_v14, %v1520_v38  ;;  %v1891_v27 = vpop.f32.mrf.mxu3 }
 0x1f7   : > { %v1447_v56 = vpop.f32.mrf.mxu1 }
 0x1f8   : > { %v1967_v59 = vadd.f32 %v1891_v27, %v1745_v55  ;;  %v1521_v1 = vadd.f32 %v1447_v56, %v3357_v4 }
 0x1fa   : > { %v2116_v31 = vpop.f32.mrf.mxu0  ;;  %v2189_v8 = vadd.f32 %v2113_v60, %v1967_v59  ;;  %2713 = vmatmul.msk.bf16.gmra.mxu1 %vm376_vm1, %v3363_v53  ;;  %2762 = vmatmul.msk.bf16.gmra.mxu2 %vm376_vm1, %v3365_v50 }
 0x1fb   : > { %2811 = vmatmul.msk.bf16.gmra.mxu3 %vm376_vm1, %v1816_v0 }
 0x1fc   : > { %2221 = vst [vmem:[%s2976_s27 + $0x18] sm:$0xff] %v2189_v8  ;;  %v2253_v58 = vadd.f32 %v2252_v63, %v2189_v8  ;;  %v2294_v16 = vmul.f32 %v2189_v8, %v2189_v8 }
 0x1fd   : > { %2860 = vmatmul.msk.bf16.gmra.mxu0 %vm376_vm1, %v3385_v61  ;;  %v1672_v39 = vpop.f32.mrf.mxu2 }
 0x1fe   : > { %v2325_v37 = vadd.f32 %v2324_v35, %v2294_v16  ;;  %v1746_v9 = vadd.f32 %v1672_v39, %v1521_v1  ;;  %v1894_v53 = vpop.f32.mrf.mxu3  ;;  %v3791_v1 = vld [vmem:[#allocation16_spill] sm:$0xff] }
 0x1ff   : > { %v1449_v51 = vpop.f32.mrf.mxu1 }
 0x200   : > { %v1968_v57 = vadd.f32 %v1894_v53, %v1746_v9  ;;  %v1522_v17 = vadd.f32 %v1449_v51, %v3790_v24  ;;  %v2793_v9 = vld [vmem:[%s2971_s24 + $0x159] sm:$0xff] }
 0x202   : > { %v2118_v48 = vpop.f32.mrf.mxu0  ;;  %v2190_v50 = vadd.f32 %v2116_v31, %v1968_v57 }
 0x204   : > { %2222 = vst [vmem:[%s2976_s27 + $0x20] sm:$0xff] %v2190_v50  ;;  %v2254_v49 = vadd.f32 %v2253_v58, %v2190_v50  ;;  %v2295_v40 = vmul.f32 %v2190_v50, %v2190_v50 }
 0x205   : > { %v1674_v60 = vpop.f32.mrf.mxu2 }
 0x206   : > { %v2326_v20 = vadd.f32 %v2325_v37, %v2295_v40  ;;  %v1747_v63 = vadd.f32 %v1674_v60, %v1522_v17  ;;  %v1896_v4 = vpop.f32.mrf.mxu3  ;;  %v2792_v37 = vld [vmem:[%s2971_s24 + $0x151] sm:$0xff] }
 0x207   : > { %v1452_v36 = vpop.f32.mrf.mxu1  ;;  %v1818_v50 = vpack.c.bf16 %v2793_v9, %v2792_v37 }
 0x208   : > { %v1969_v38 = vadd.f32 %v1896_v4, %v1747_v63  ;;  %v1523_v55 = vadd.f32 %v1452_v36, %v3379_v6 }
 0x20a   : > { %v2121_v7 = vpop.f32.mrf.mxu0  ;;  %v2191_v46 = vadd.f32 %v2118_v48, %v1969_v38  ;;  %2714 = vmatmul.msk.bf16.gmra.mxu1 %vm376_vm1, %v3385_v61  ;;  %2763 = vmatmul.msk.bf16.gmra.mxu2 %vm376_vm1, %v3387_v3 }
 0x20b   : > { %2812 = vmatmul.msk.bf16.gmra.mxu3 %vm376_vm1, %v1817_v43 }
 0x20c   : > { %2223 = vst [vmem:[%s2976_s27 + $0x28] sm:$0xff] %v2191_v46  ;;  %v2255_v14 = vadd.f32 %v2254_v49, %v2191_v46  ;;  %v2296_v35 = vmul.f32 %v2191_v46, %v2191_v46  ;;  %v3792_v46 = vld [vmem:[#allocation17_spill] sm:$0xff] }
 0x20d   : > { %2861 = vmatmul.msk.bf16.gmra.mxu0 %vm376_vm1, %v3407_v33  ;;  %v1677_v27 = vpop.f32.mrf.mxu2 }
 0x20e   : > { %v2327_v56 = vadd.f32 %v2326_v20, %v2296_v35  ;;  %v1748_v0 = vadd.f32 %v1677_v27, %v1523_v55  ;;  %v1899_v61 = vpop.f32.mrf.mxu3  ;;  %v2794_v35 = vld [vmem:[%s2971_s24 + $0x169] sm:$0xff]  ;;  %v2795_v55 = vld [vmem:[%s2971_s24 + $0x171] sm:$0xff] }
 0x20f   : > { %v1454_v59 = vpop.f32.mrf.mxu1 }
 0x210   : > { %v1970_v31 = vadd.f32 %v1899_v61, %v1748_v0  ;;  %v1524_v39 = vadd.f32 %v1454_v59, %v3791_v1  ;;  %v1819_v59 = vpack.c.bf16 %v2795_v55, %v2794_v35  ;;  %v3793_v1 = vld [vmem:[#allocation18_spill] sm:$0xff] }
 0x212   : > { %v2123_v8 = vpop.f32.mrf.mxu0  ;;  %v2192_v3 = vadd.f32 %v2121_v7, %v1970_v31 }
 0x214   : > { %2224 = vst [vmem:[%s2976_s27 + $0x30] sm:$0xff] %v2192_v3  ;;  %v2256_v58 = vadd.f32 %v2255_v14, %v2192_v3  ;;  %v2297_v16 = vmul.f32 %v2192_v3, %v2192_v3 }
 0x215   : > { %v1679_v53 = vpop.f32.mrf.mxu2 }
 0x216   : > { %v2328_v51 = vadd.f32 %v2327_v56, %v2297_v16  ;;  %v1749_v57 = vadd.f32 %v1679_v53, %v1524_v39  ;;  %v1901_v6 = vpop.f32.mrf.mxu3 }
 0x217   : > { %v1457_v48 = vpop.f32.mrf.mxu1 }
 0x218   : > { %v1971_v49 = vadd.f32 %v1901_v6, %v1749_v57  ;;  %v1525_v11 = vadd.f32 %v1457_v48, %v3400_v47  ;;  %v2699_v48 = vld [vmem:[%s2971_s24 + $0x172] sm:$0xff] }
 0x21a   : > { %v2126_v40 = vpop.f32.mrf.mxu0  ;;  %v2193_v24 = vadd.f32 %v2123_v8, %v1971_v49  ;;  %2715 = vmatmul.msk.bf16.gmra.mxu1 %vm376_vm1, %v3407_v33  ;;  %2764 = vmatmul.msk.bf16.gmra.mxu2 %vm376_vm1, %v3409_v13  ;;  %v2748_v49 = vld [vmem:[%s2971_s24 + $0x188] sm:$0xff] }
 0x21b   : > { %2813 = vmatmul.msk.bf16.gmra.mxu3 %vm376_vm1, %v1818_v50  ;;  %v2747_v50 = vld [vmem:[%s2971_s24 + $0x180] sm:$0xff] }
 0x21c   : > { %2225 = vst [vmem:[%s2976_s27 + $0x38] sm:$0xff] %v2193_v24  ;;  %v2257_v17 = vadd.f32 %v2256_v58, %v2193_v24  ;;  %v2298_v52 = vmul.f32 %v2193_v24, %v2193_v24 }
 0x21d   : > { %2862 = vmatmul.msk.bf16.gmra.mxu0 %vm376_vm1, %v3429_v45  ;;  %v1682_v60 = vpop.f32.mrf.mxu2 }
 0x21e   : > { %v2329_v20 = vadd.f32 %v2328_v51, %v2298_v52  ;;  %v1750_v63 = vadd.f32 %v1682_v60, %v1525_v11  ;;  %v1904_v33 = vpop.f32.mrf.mxu3  ;;  %v3794_v52 = vld [vmem:[#allocation19_spill] sm:$0xff] }
 0x21f   : > { %v1459_v4 = vpop.f32.mrf.mxu1  ;;  %v2797_v60 = vld [vmem:[%s2971_s24 + $0x189] sm:$0xff] }
 0x220   : > { %v1972_v36 = vadd.f32 %v1904_v33, %v1750_v63  ;;  %v1526_v14 = vadd.f32 %v1459_v4, %v3792_v46  ;;  %v2846_v63 = vld [vmem:[%s2971_s24 + $0x18a] sm:$0xff] }
 0x222   : > { %v2128_v43 = vpop.f32.mrf.mxu0  ;;  %v2194_v13 = vadd.f32 %v2126_v40, %v1972_v36  ;;  %v2796_v40 = vld [vmem:[%s2971_s24 + $0x181] sm:$0xff] }
 0x223   : > { %v1820_v46 = vpack.c.bf16 %v2797_v60, %v2796_v40 }
 0x224   : > { %2226 = vst [vmem:[%s2976_s27 + $0x40] sm:$0xff] %v2194_v13  ;;  %v2258_v38 = vadd.f32 %v2257_v17, %v2194_v13  ;;  %v2299_v7 = vmul.f32 %v2194_v13, %v2194_v13 }
 0x225   : > { %v1684_v27 = vpop.f32.mrf.mxu2 }
 0x226   : > { %v2330_v56 = vadd.f32 %v2329_v20, %v2299_v7  ;;  %v1751_v0 = vadd.f32 %v1684_v27, %v1526_v14  ;;  %v1906_v47 = vpop.f32.mrf.mxu3  ;;  %v2845_v20 = vld [vmem:[%s2971_s24 + $0x182] sm:$0xff] }
 0x227   : > { %v1462_v61 = vpop.f32.mrf.mxu1  ;;  %v2042_v14 = vpack.c.bf16 %v2846_v63, %v2845_v20 }
 0x228   : > { %v1973_v31 = vadd.f32 %v1906_v47, %v1751_v0  ;;  %v1527_v39 = vadd.f32 %v1462_v61, %v3793_v1 }
 0x22a   : > { %v2131_v8 = vpop.f32.mrf.mxu0  ;;  %v2195_v3 = vadd.f32 %v2128_v43, %v1973_v31  ;;  %2716 = vmatmul.msk.bf16.gmra.mxu1 %vm376_vm1, %v3429_v45  ;;  %2765 = vmatmul.msk.bf16.gmra.mxu2 %vm376_vm1, %v3431_v41 }
 0x22b   : > { %2814 = vmatmul.msk.bf16.gmra.mxu3 %vm376_vm1, %v1819_v59 }
 0x22c   : > { %2227 = vst [vmem:[%s2976_s27 + $0x48] sm:$0xff] %v2195_v3  ;;  %v2259_v58 = vadd.f32 %v2258_v38, %v2195_v3  ;;  %v2300_v16 = vmul.f32 %v2195_v3, %v2195_v3  ;;  %v1598_v38 = vpack.c.bf16 %v2748_v49, %v2747_v50 }
 0x22d   : > { %2863 = vmatmul.msk.bf16.gmra.mxu0 %vm376_vm1, %v3453_v12  ;;  %v1687_v45 = vpop.f32.mrf.mxu2  ;;  %v2698_v12 = vld [vmem:[%s2971_s24 + $0x16a] sm:$0xff] }
 0x22e   : > { %v2331_v37 = vadd.f32 %v2330_v56, %v2300_v16  ;;  %v1752_v9 = vadd.f32 %v1687_v45, %v1527_v39  ;;  %v1909_v41 = vpop.f32.mrf.mxu3  ;;  %v1373_v13 = vpack.c.bf16 %v2699_v48, %v2698_v12  ;;  %v2749_v39 = vld [vmem:[%s2971_s24 + $0x198] sm:$0xff]  ;;  %v2750_v45 = vld [vmem:[%s2971_s24 + $0x1a0] sm:$0xff] }
 0x22f   : > { %v1464_v53 = vpop.f32.mrf.mxu1  ;;  %v1599_v49 = vpack.c.bf16 %v2750_v45, %v2749_v39 }
 0x230   : > { %v1974_v51 = vadd.f32 %v1909_v41, %v1752_v9  ;;  %v1528_v11 = vadd.f32 %v1464_v53, %v3794_v52 }
 0x232   : > { %v2133_v57 = vpop.f32.mrf.mxu0  ;;  %v2196_v6 = vadd.f32 %v2131_v8, %v1974_v51  ;;  %v2847_v51 = vld [vmem:[%s2971_s24 + $0x19a] sm:$0xff] }
 0x234   : > { %2228 = vst [vmem:[%s2976_s27 + $0x50] sm:$0xff] %v2196_v6  ;;  %v2260_v24 = vadd.f32 %v2259_v58, %v2196_v6  ;;  %v2301_v17 = vmul.f32 %v2196_v6, %v2196_v6 }
 0x235   : > { %v1689_v33 = vpop.f32.mrf.mxu2 }
 0x236   : > { %v2332_v4 = vadd.f32 %v2331_v37, %v2301_v17  ;;  %v1753_v36 = vadd.f32 %v1689_v33, %v1528_v11  ;;  %v1911_v43 = vpop.f32.mrf.mxu3  ;;  %v2798_v37 = vld [vmem:[%s2971_s24 + $0x199] sm:$0xff] }
 0x237   : > { %v1467_v7 = vpop.f32.mrf.mxu1 }
 0x238   : > { %v1975_v35 = vadd.f32 %v1911_v43, %v1753_v36  ;;  %v1529_v47 = vadd.f32 %v1467_v7, %v3444_v32  ;;  %v2799_v32 = vld [vmem:[%s2971_s24 + $0x1a1] sm:$0xff] }
 0x23a   : > { %v2136_v55 = vpop.f32.mrf.mxu0  ;;  %v2197_v27 = vadd.f32 %v2133_v57, %v1975_v35  ;;  %2717 = vmatmul.msk.bf16.gmra.mxu1 %vm376_vm1, %v1373_v13  ;;  %2766 = vmatmul.msk.bf16.gmra.mxu2 %vm376_vm1, %v1598_v38  ;;  %v2848_v57 = vld [vmem:[%s2971_s24 + $0x1a2] sm:$0xff] }
 0x23b   : > { %2815 = vmatmul.msk.bf16.gmra.mxu3 %vm376_vm1, %v1820_v46  ;;  %v2043_v17 = vpack.c.bf16 %v2848_v57, %v2847_v51 }
 0x23c   : > { %2229 = vst [vmem:[%s2976_s27 + $0x58] sm:$0xff] %v2197_v27  ;;  %v2261_v56 = vadd.f32 %v2260_v24, %v2197_v27  ;;  %v2302_v0 = vmul.f32 %v2197_v27, %v2197_v27  ;;  %v1821_v24 = vpack.c.bf16 %v2799_v32, %v2798_v37 }
 0x23d   : > { %2864 = vmatmul.msk.bf16.gmra.mxu0 %vm376_vm1, %v2042_v14  ;;  %v1692_v61 = vpop.f32.mrf.mxu2 }
 0x23e   : > { %v2333_v59 = vadd.f32 %v2332_v4, %v2302_v0  ;;  %v1754_v31 = vadd.f32 %v1692_v61, %v1529_v47  ;;  %v1914_v8 = vpop.f32.mrf.mxu3 }
 0x23f   : > { %v1469_v3 = vpop.f32.mrf.mxu1 }
 0x240   : > { %v1976_v58 = vadd.f32 %v1914_v8, %v1754_v31  ;;  %v1530_v53 = vadd.f32 %v1469_v3, %v3459_v18 }
 0x242   : > { %v2138_v16 = vpop.f32.mrf.mxu0  ;;  %v2198_v1 = vadd.f32 %v2136_v55, %v1976_v58 }
 0x244   : > { %2230 = vst [vmem:[%s2976_s27 + $0x60] sm:$0xff] %v2198_v1  ;;  %v2262_v9 = vadd.f32 %v2261_v56, %v2198_v1  ;;  %v2303_v41 = vmul.f32 %v2198_v1, %v2198_v1 }
 0x245   : > { %v1694_v6 = vpop.f32.mrf.mxu2 }
 0x246   : > { %v2334_v12 = vadd.f32 %v2333_v59, %v2303_v41  ;;  %v1755_v48 = vadd.f32 %v1694_v6, %v1530_v53  ;;  %v1916_v50 = vpop.f32.mrf.mxu3 }
 0x247   : > { %v1472_v40 = vpop.f32.mrf.mxu1 }
 0x248   : > { %v1977_v52 = vadd.f32 %v1916_v50, %v1755_v48  ;;  %v1531_v63 = vadd.f32 %v1472_v40, %v3464_v44 }
 0x24a   : > { %v2141_v11 = vpop.f32.mrf.mxu0  ;;  %v2199_v60 = vadd.f32 %v2138_v16, %v1977_v52  ;;  %2718 = vmatmul.msk.bf16.gmra.mxu1 %vm376_vm1, %v2042_v14  ;;  %2767 = vmatmul.msk.bf16.gmra.mxu2 %vm376_vm1, %v1599_v49 }
 0x24b   : > { %2816 = vmatmul.msk.bf16.gmra.mxu3 %vm376_vm1, %v1821_v24 }
 0x24c   : > { %2231 = vst [vmem:[%s2976_s27 + $0x68] sm:$0xff] %v2199_v60  ;;  %v2263_v18 = vadd.f32 %v2262_v9, %v2199_v60  ;;  %v2304_v20 = vmul.f32 %v2199_v60, %v2199_v60 }
 0x24d   : > { %2865 = vmatmul.msk.bf16.gmra.mxu0 %vm376_vm1, %v2043_v17  ;;  %v1697_v33 = vpop.f32.mrf.mxu2 }
 0x24e   : > { %v2335_v4 = vadd.f32 %v2334_v12, %v2304_v20  ;;  %v1756_v36 = vadd.f32 %v1697_v33, %v1531_v63  ;;  %v1919_v43 = vpop.f32.mrf.mxu3 }
 0x24f   : > { %v1474_v13 = vpop.f32.mrf.mxu1 }
 0x250   : > { %v1978_v38 = vadd.f32 %v1919_v43, %v1756_v36  ;;  %v1532_v55 = vadd.f32 %v1474_v13, %v3471_v30 }
 0x252   : > { %v2143_v7 = vpop.f32.mrf.mxu0  ;;  %v2200_v46 = vadd.f32 %v2141_v11, %v1978_v38 }
 0x254   : > { %2232 = vst [vmem:[%s2976_s27 + $0x70] sm:$0xff] %v2200_v46  ;;  %v2264_v14 = vadd.f32 %v2263_v18, %v2200_v46  ;;  %v2305_v35 = vmul.f32 %v2200_v46, %v2200_v46 }
 0x255   : > { %v1699_v27 = vpop.f32.mrf.mxu2 }
 0x256   : > { %v2336_v56 = vadd.f32 %v2335_v4, %v2305_v35  ;;  %v1757_v0 = vadd.f32 %v1699_v27, %v1532_v55  ;;  %v1921_v47 = vpop.f32.mrf.mxu3 }
 0x257   : > { %v1477_v61 = vpop.f32.mrf.mxu1 }
 0x258   : > { %v1979_v44 = vadd.f32 %v1921_v47, %v1757_v0  ;;  %v1533_v58 = vadd.f32 %v1477_v61, %v3478_v19 }
 0x25a   : > { %v2146_v59 = vpop.f32.mrf.mxu0  ;;  %v2201_v31 = vadd.f32 %v2143_v7, %v1979_v44 }
 0x25c   : > { %2233 = vst [vmem:[%s2976_s27 + $0x78] sm:$0xff] %v2201_v31  ;;  %v2265_v8 = vadd.f32 %v2264_v14, %v2201_v31  ;;  %v2306_v3 = vmul.f32 %v2201_v31, %v2201_v31 }
 0x25d   : > { %v1702_v16 = vpop.f32.mrf.mxu2 }
 0x25e   : > { %v2337_v1 = vadd.f32 %v2336_v56, %v2306_v3  ;;  %v1758_v39 = vadd.f32 %v1702_v16, %v1533_v58  ;;  %v1924_v45 = vpop.f32.mrf.mxu3 }
 0x25f   : > { %v1479_v37 = vpop.f32.mrf.mxu1 }
 0x260   : > { %v1980_v30 = vadd.f32 %v1924_v45, %v1758_v39  ;;  %v1534_v51 = vadd.f32 %v1479_v37, %v3485_v5 }
 0x262   : > { %v2148_v9 = vpop.f32.mrf.mxu0  ;;  %v2202_v41 = vadd.f32 %v2146_v59, %v1980_v30 }
 0x264   : > { %2234 = vst [vmem:[%s2976_s27 + $0x80] sm:$0xff] %v2202_v41  ;;  %v2266_v53 = vadd.f32 %v2265_v8, %v2202_v41  ;;  %v2307_v32 = vmul.f32 %v2202_v41, %v2202_v41 }
 0x265   : > { %v1704_v57 = vpop.f32.mrf.mxu2 }
 0x266   : > { %v2338_v6 = vadd.f32 %v2337_v1, %v2307_v32  ;;  %v1759_v12 = vadd.f32 %v1704_v57, %v1534_v51  ;;  %v1926_v48 = vpop.f32.mrf.mxu3 }
 0x267   : > { %v1482_v50 = vpop.f32.mrf.mxu1 }
 0x268   : > { %v1981_v19 = vadd.f32 %v1926_v48, %v1759_v12  ;;  %v1535_v52 = vadd.f32 %v1482_v50, %v3492_v25 }
 0x26a   : > { %v2151_v49 = vpop.f32.mrf.mxu0  ;;  %v2203_v40 = vadd.f32 %v2148_v9, %v1981_v19 }
 0x26c   : > { %2235 = vst [vmem:[%s2976_s27 + $0x88] sm:$0xff] %v2203_v40  ;;  %v2267_v24 = vadd.f32 %v2266_v53, %v2203_v40  ;;  %v2308_v17 = vmul.f32 %v2203_v40, %v2203_v40 }
 0x26d   : > { %v1707_v11 = vpop.f32.mrf.mxu2 }
 0x26e   : > { %v2339_v60 = vadd.f32 %v2338_v6, %v2308_v17  ;;  %v1760_v18 = vadd.f32 %v1707_v11, %v1535_v52  ;;  %v1929_v20 = vpop.f32.mrf.mxu3 }
 0x26f   : > { %v1484_v63 = vpop.f32.mrf.mxu1 }
 0x270   : > { %v1982_v5 = vadd.f32 %v1929_v20, %v1760_v18  ;;  %v1536_v13 = vadd.f32 %v1484_v63, %v3501_v62 }
 0x272   : > { %v2153_v33 = vpop.f32.mrf.mxu0  ;;  %v2204_v4 = vadd.f32 %v2151_v49, %v1982_v5 }
 0x274   : > { %2236 = vst [vmem:[%s2976_s27 + $0x90] sm:$0xff] %v2204_v4  ;;  %v2268_v36 = vadd.f32 %v2267_v24, %v2204_v4  ;;  %v2309_v43 = vmul.f32 %v2204_v4, %v2204_v4 }
 0x275   : > { %v1709_v38 = vpop.f32.mrf.mxu2 }
 0x276   : > { %v2340_v7 = vadd.f32 %v2339_v60, %v2309_v43  ;;  %v1761_v46 = vadd.f32 %v1709_v38, %v1536_v13  ;;  %v1931_v14 = vpop.f32.mrf.mxu3 }
 0x277   : > { %v1487_v35 = vpop.f32.mrf.mxu1 }
 0x278   : > { %v1983_v25 = vadd.f32 %v1931_v14, %v1761_v46  ;;  %v1537_v47 = vadd.f32 %v1487_v35, %v3507_v22 }
 0x27a   : > { %v2156_v55 = vpop.f32.mrf.mxu0  ;;  %v2205_v27 = vadd.f32 %v2153_v33, %v1983_v25 }
 0x27c   : > { %2237 = vst [vmem:[%s2976_s27 + $0x98] sm:$0xff] %v2205_v27  ;;  %v2269_v56 = vadd.f32 %v2268_v36, %v2205_v27  ;;  %v2310_v0 = vmul.f32 %v2205_v27, %v2205_v27 }
 0x27d   : > { %v1712_v61 = vpop.f32.mrf.mxu2 }
 0x27e   : > { %v2341_v44 = vadd.f32 %v2340_v7, %v2310_v0  ;;  %v1762_v59 = vadd.f32 %v1712_v61, %v1537_v47  ;;  %v1934_v31 = vpop.f32.mrf.mxu3 }
 0x27f   : > { %v1489_v8 = vpop.f32.mrf.mxu1 }
 0x280   : > { %v1984_v62 = vadd.f32 %v1934_v31, %v1762_v59  ;;  %v1538_v39 = vadd.f32 %v1489_v8, %v3516_v26 }
 0x282   : > { %v2158_v3 = vpop.f32.mrf.mxu0  ;;  %v2206_v58 = vadd.f32 %v2156_v55, %v1984_v62 }
 0x284   : > { %2238 = vst [vmem:[%s2976_s27 + $0xa0] sm:$0xff] %v2206_v58  ;;  %v2270_v16 = vadd.f32 %v2269_v56, %v2206_v58  ;;  %v2311_v1 = vmul.f32 %v2206_v58, %v2206_v58 }
 0x285   : > { %v1714_v45 = vpop.f32.mrf.mxu2 }
 0x286   : > { %v2342_v37 = vadd.f32 %v2341_v44, %v2311_v1  ;;  %v1763_v30 = vadd.f32 %v1714_v45, %v1538_v39  ;;  %v1936_v9 = vpop.f32.mrf.mxu3 }
 0x287   : > { %v1492_v41 = vpop.f32.mrf.mxu1 }
 0x288   : > { %v1985_v22 = vadd.f32 %v1936_v9, %v1763_v30  ;;  %v1539_v6 = vadd.f32 %v1492_v41, %v3522_v29 }
 0x28a   : > { %v2161_v53 = vpop.f32.mrf.mxu0  ;;  %v2207_v32 = vadd.f32 %v2158_v3, %v1985_v22 }
 0x28c   : > { %2239 = vst [vmem:[%s2976_s27 + $0xa8] sm:$0xff] %v2207_v32  ;;  %v2271_v51 = vadd.f32 %v2270_v16, %v2207_v32  ;;  %v2312_v57 = vmul.f32 %v2207_v32, %v2207_v32 }
 0x28d   : > { %v1717_v12 = vpop.f32.mrf.mxu2 }
 0x28e   : > { %v2343_v48 = vadd.f32 %v2342_v37, %v2312_v57  ;;  %v1764_v50 = vadd.f32 %v1717_v12, %v1539_v6  ;;  %v1939_v19 = vpop.f32.mrf.mxu3 }
 0x28f   : > { %v1494_v49 = vpop.f32.mrf.mxu1 }
 0x290   : > { %v1986_v26 = vadd.f32 %v1939_v19, %v1764_v50  ;;  %v1540_v11 = vadd.f32 %v1494_v49, %v3531_v23 }
 0x292   : > { %v2163_v40 = vpop.f32.mrf.mxu0  ;;  %v2208_v24 = vadd.f32 %v2161_v53, %v1986_v26 }
 0x294   : > { %2240 = vst [vmem:[%s2976_s27 + $0xb0] sm:$0xff] %v2208_v24  ;;  %v2272_v17 = vadd.f32 %v2271_v51, %v2208_v24  ;;  %v2313_v52 = vmul.f32 %v2208_v24, %v2208_v24 }
 0x295   : > { %v1719_v60 = vpop.f32.mrf.mxu2 }
 0x296   : > { %v2344_v18 = vadd.f32 %v2343_v48, %v2313_v52  ;;  %v1765_v20 = vadd.f32 %v1719_v60, %v1540_v11  ;;  %v1941_v63 = vpop.f32.mrf.mxu3 }
 0x297   : > { %v1497_v5 = vpop.f32.mrf.mxu1 }
 0x298   : > { %v1987_v29 = vadd.f32 %v1941_v63, %v1765_v20  ;;  %v1541_v13 = vadd.f32 %v1497_v5, %v3537_v21 }
 0x29a   : > { %v2166_v33 = vpop.f32.mrf.mxu0  ;;  %v2209_v4 = vadd.f32 %v2163_v40, %v1987_v29 }
 0x29c   : > { %2241 = vst [vmem:[%s2976_s27 + $0xb8] sm:$0xff] %v2209_v4  ;;  %v2273_v36 = vadd.f32 %v2272_v17, %v2209_v4  ;;  %v2314_v43 = vmul.f32 %v2209_v4, %v2209_v4 }
 0x29d   : > { %v1722_v38 = vpop.f32.mrf.mxu2 }
 0x29e   : > { %v2345_v7 = vadd.f32 %v2344_v18, %v2314_v43  ;;  %v1766_v46 = vadd.f32 %v1722_v38, %v1541_v13  ;;  %v1944_v14 = vpop.f32.mrf.mxu3 }
 0x29f   : > { %v1499_v35 = vpop.f32.mrf.mxu1 }
 0x2a0   : > { %v1988_v23 = vadd.f32 %v1944_v14, %v1766_v46  ;;  %v1542_v0 = vadd.f32 %v1499_v35, %v3546_v2 }
 0x2a2   : > { %v2168_v25 = vpop.f32.mrf.mxu0  ;;  %v2210_v55 = vadd.f32 %v2166_v33, %v1988_v23 }
 0x2a4   : > { %2242 = vst [vmem:[%s2976_s27 + $0xc0] sm:$0xff] %v2210_v55  ;;  %v2274_v27 = vadd.f32 %v2273_v36, %v2210_v55  ;;  %v2315_v56 = vmul.f32 %v2210_v55, %v2210_v55 }
 0x2a5   : > { %v1724_v47 = vpop.f32.mrf.mxu2 }
 0x2a6   : > { %v2346_v61 = vadd.f32 %v2345_v7, %v2315_v56  ;;  %v1767_v44 = vadd.f32 %v1724_v47, %v1542_v0  ;;  %v1946_v59 = vpop.f32.mrf.mxu3 }
 0x2a7   : > { %v1502_v31 = vpop.f32.mrf.mxu1 }
 0x2a8   : > { %v1989_v21 = vadd.f32 %v1946_v59, %v1767_v44  ;;  %v1543_v16 = vadd.f32 %v1502_v31, %v3552_v54 }
 0x2aa   : > { %v2171_v8 = vpop.f32.mrf.mxu0  ;;  %v2211_v62 = vadd.f32 %v2168_v25, %v1989_v21 }
 0x2ac   : > { %2243 = vst [vmem:[%s2976_s27 + $0xc8] sm:$0xff] %v2211_v62  ;;  %v2275_v3 = vadd.f32 %v2274_v27, %v2211_v62  ;;  %v2316_v58 = vmul.f32 %v2211_v62, %v2211_v62 }
 0x2ad   : > { %v1727_v1 = vpop.f32.mrf.mxu2 }
 0x2ae   : > { %v2347_v39 = vadd.f32 %v2346_v61, %v2316_v58  ;;  %v1768_v45 = vadd.f32 %v1727_v1, %v1543_v16  ;;  %v1949_v37 = vpop.f32.mrf.mxu3 }
 0x2af   : > { %v1504_v30 = vpop.f32.mrf.mxu1 }
 0x2b0   : > { %v1990_v2 = vadd.f32 %v1949_v37, %v1768_v45  ;;  %v1544_v32 = vadd.f32 %v1504_v30, %v3561_v15 }
 0x2b2   : > { %v2173_v9 = vpop.f32.mrf.mxu0  ;;  %v2212_v41 = vadd.f32 %v2171_v8, %v1990_v2 }
 0x2b4   : > { %2244 = vst [vmem:[%s2976_s27 + $0xd0] sm:$0xff] %v2212_v41  ;;  %v2276_v22 = vadd.f32 %v2275_v3, %v2212_v41  ;;  %v2317_v53 = vmul.f32 %v2212_v41, %v2212_v41 }
 0x2b5   : > { %v1729_v51 = vpop.f32.mrf.mxu2 }
 0x2b6   : > { %v2348_v57 = vadd.f32 %v2347_v39, %v2317_v53  ;;  %v1769_v6 = vadd.f32 %v1729_v51, %v1544_v32  ;;  %v1951_v12 = vpop.f32.mrf.mxu3  ;;  %v2250_v53 = vld [vmem:[%s3751_s3] sm:$0x1] }
 0x2b7   : > { %v1507_v54 = vpop.f32.mrf.mxu1 }
 0x2b8   : > { %v1991_v48 = vadd.f32 %v1951_v12, %v1769_v6  ;;  %v1545_v40 = vadd.f32 %v1507_v54, %v3567_v42 }
 0x2ba   : > { %v2213_v50 = vadd.f32 %v2173_v9, %v1991_v48  ;;  %v2176_v19 = vpop.f32.mrf.mxu0 }
 0x2bc   : > { %2245 = vst [vmem:[%s2976_s27 + $0xd8] sm:$0xff] %v2213_v50  ;;  %v2277_v49 = vadd.f32 %v2276_v22, %v2213_v50  ;;  %v2318_v26 = vmul.f32 %v2213_v50, %v2213_v50 }
 0x2bd   : > { %v1732_v24 = vpop.f32.mrf.mxu2 }
 0x2be   : > { %v2349_v17 = vadd.f32 %v2348_v57, %v2318_v26  ;;  %v1770_v52 = vadd.f32 %v1732_v24, %v1545_v40  ;;  %v1954_v11 = vpop.f32.mrf.mxu3  ;;  %v2290_v57 = vld [vmem:[%s3752_s4] sm:$0x1] }
 0x2bf   : > { %v1509_v15 = vpop.f32.mrf.mxu1 }
 0x2c0   : > { %v1992_v60 = vadd.f32 %v1954_v11, %v1770_v52  ;;  %v1546_v5 = vadd.f32 %v1509_v15, %v3576_v34 }
 0x2c2   : > { %v2214_v18 = vadd.f32 %v2176_v19, %v1992_v60  ;;  %v2178_v29 = vpop.f32.mrf.mxu0 }
 0x2c4   : > { %2246 = vst [vmem:[%s2976_s27 + $0xe0] sm:$0xff] %v2214_v18  ;;  %v2278_v20 = vadd.f32 %v2277_v49, %v2214_v18  ;;  %v2319_v63 = vmul.f32 %v2214_v18, %v2214_v18 }
 0x2c5   : > { %v1734_v33 = vpop.f32.mrf.mxu2 }
 0x2c6   : > { %v2350_v4 = vadd.f32 %v2349_v17, %v2319_v63  ;;  %v1771_v36 = vadd.f32 %v1734_v33, %v1546_v5  ;;  %v1956_v43 = vpop.f32.mrf.mxu3 }
 0x2c7   : > { %v1512_v42 = vpop.f32.mrf.mxu1 }
 0x2c8   : > { %v1993_v13 = vadd.f32 %v1956_v43, %v1771_v36  ;;  %v1547_v14 = vadd.f32 %v1512_v42, %v3582_v28 }
 0x2ca   : > { %v2215_v38 = vadd.f32 %v2178_v29, %v1993_v13  ;;  %v2181_v34 = vpop.f32.mrf.mxu0 }
 0x2cc   : > { %2247 = vst [vmem:[%s2976_s27 + $0xe8] sm:$0xff] %v2215_v38  ;;  %v2279_v7 = vadd.f32 %v2278_v20, %v2215_v38  ;;  %v2320_v46 = vmul.f32 %v2215_v38, %v2215_v38 }
 0x2cd   : > { %v1737_v35 = vpop.f32.mrf.mxu2 }
 0x2ce   : > { %v2351_v23 = vadd.f32 %v2350_v4, %v2320_v46  ;;  %v1772_v25 = vadd.f32 %v1737_v35, %v1547_v14  ;;  %v1959_v55 = vpop.f32.mrf.mxu3 }
 0x2cf   : > { %v1514_v56 = vpop.f32.mrf.mxu1 }
 0x2d0   : > { %v1994_v27 = vadd.f32 %v1959_v55, %v1772_v25  ;;  %v1548_v44 = vadd.f32 %v1514_v56, %v3591_v10 }
 0x2d2   : > { %v2216_v0 = vadd.f32 %v2181_v34, %v1994_v27  ;;  %v2183_v28 = vpop.f32.mrf.mxu0 }
 0x2d4   : > { %2248 = vst [vmem:[%s2976_s27 + $0xf0] sm:$0xff] %v2216_v0  ;;  %v2280_v47 = vadd.f32 %v2279_v7, %v2216_v0  ;;  %v2321_v61 = vmul.f32 %v2216_v0, %v2216_v0 }
 0x2d5   : > { %v1739_v59 = vpop.f32.mrf.mxu2 }
 0x2d6   : > { %v2352_v31 = vadd.f32 %v2351_v23, %v2321_v61  ;;  %v1773_v21 = vadd.f32 %v1739_v59, %v1548_v44  ;;  %v1961_v8 = vpop.f32.mrf.mxu3 }
 0x2d8   : > { %v1995_v62 = vadd.f32 %v1961_v8, %v1773_v21 }
 0x2da   : > { %v2217_v3 = vadd.f32 %v2183_v28, %v1995_v62 }
 0x2dc   : > { %2249 = vst [vmem:[%s2976_s27 + $0xf8] sm:$0xff] %v2217_v3  ;;  %v2281_v58 = vadd.f32 %v2280_v47, %v2217_v3  ;;  %v2322_v16 = vmul.f32 %v2217_v3, %v2217_v3 }
 0x2de   : > { %v2282_v1 = vrot.slane %v2281_v58, 4  ;;  %v2353_v39 = vadd.f32 %v2352_v31, %v2322_v16 }
 0x2e0   : > { %v2283_v45 = vadd.f32 %v2282_v1, %v2281_v58  ;;  %v2354_v37 = vrot.slane %v2353_v39, 4 }
 0x2e2   : > { %v2284_v30 = vrot.slane %v2283_v45, 2  ;;  %v2355_v2 = vadd.f32 %v2354_v37, %v2353_v39 }
 0x2e4   : > { %v2285_v9 = vadd.f32 %v2284_v30, %v2283_v45  ;;  %v2356_v41 = vrot.slane %v2355_v2, 2 }
 0x2e6   : > { %v2286_v22 = vrot.slane %v2285_v9, 1  ;;  %v2357_v10 = vadd.f32 %v2356_v41, %v2355_v2 }
 0x2e8   : > { %v2287_v32 = vadd.f32 %v2286_v22, %v2285_v9  ;;  %v2358_v51 = vrot.slane %v2357_v10, 1 }
 0x2ea   : > { %v2288_v6 = vadd.f32 %v2287_v32, %v2250_v53  ;;  %v2359_v12 = vadd.f32 %v2358_v51, %v2357_v10 }
 0x2ec   : > { %2289 = vst [vmem:[%s3751_s3] sm:$0x1] %v2288_v6  ;;  %v2360_v54 = vadd.f32 %v2359_v12, %v2290_v57 }
 0x2ee   : > { %2361 = vst [vmem:[%s3752_s4] sm:$0x1] %v2360_v54 }
 0x2ef PF: > { %s15_s17 = sadd.s32 1, %s2922_s17   ;;  %s3795_s15 = smov %s2918_s16 }
 0x2f0   : > { %p12_p7 = scmp.ge.s32.totalorder %s15_s17, 4   ;;  %s3796_s16 = smov %s3798_s18 }
 0x2f2   :  { %14 = sbr.rel (!%p12_p7) target bundleno = 2 (0x2), region = 100 }

</bundles_post_ra>
